<compile_context>
chip_gen: v7x
topology: tpu7x:2x2x1
jax: 0.10.0
libtpu: 0.0.40
codegen_flags: <defaults>
</compile_context>

<pallas_src>
import jax
import jax.numpy as jnp
from jax.experimental import pallas as pl
from jax.experimental.pallas import tpu as pltpu

# ---------------- model hyper-params (small, synthetic demo shapes) ----------------
N = 2             # batch
C_IN = 3          # conv1 in channels  (fixed by the module)
C_OUT = 32        # conv1 out channels (fixed by the module)
H = W = 16        # spatial (224 in the original module; shrunk for the demo)
HIDDEN = 100      # fc1 out features   (fixed by the module)
NUM_CLASSES = 10  # placeholder (see TODO above)
FLAT = C_OUT * H * W          # fc1 in features (torch NCHW flatten) = 8192
KPATCH = 9 * C_IN             # im2col contraction size (K = 27)
KPATCH_PAD = 32               # sublane-aligned im2col K (zero-padded, exact)

HIDDEN_PAD = 128              # lane-dense hidden width (zero-padded, exact)
NCLS_PAD = 128                # lane-dense class width  (zero-padded, exact)


# -------- fused kernel: conv(K=32 matmul)+ReLU -> fc1+ReLU -> fc2, whole batch --------
def fused_cnn_kernel(patches_ref, wconv_ref, bconv_ref,
                     w1_ref, b1_ref, w2_ref, b2_ref, o_ref):
    # patches_ref: (N, KPATCH_PAD, H*W) bf16   im2col patches (K padded 27->32)
    # wconv_ref:   (C_OUT, KPATCH_PAD) bf16    conv weight as a matmul (padded cols = 0)
    # bconv_ref:   (C_OUT, 1)          f32
    # w1_ref:      (FLAT, HIDDEN_PAD)  bf16    fc1 weight, torch NCHW-flatten row order
    # b1_ref:      (1, HIDDEN_PAD)     f32
    # w2_ref:      (HIDDEN_PAD, NCLS_PAD) bf16 fc2 weight, 0-padded
    # b2_ref:      (1, NCLS_PAD)       f32
    # o_ref:       (N, NCLS_PAD)       f32     padded logits
    n_batch = patches_ref.shape[0]
    flat = w1_ref.shape[0]

    # conv1 + bias + ReLU per batch element: one K=32 MXU matmul each, output
    # (C_OUT, H*W) is already in torch's NCHW-flatten order (c*H*W + p).
    rows = []
    for n in range(n_batch):                       # tiny static unroll (N = 2)
        conv = jnp.dot(wconv_ref[...], patches_ref[n],
                       preferred_element_type=jnp.float32)          # (C_OUT, H*W)
        conv = jnp.maximum(conv + bconv_ref[...], 0.0)
        rows.append(conv.reshape(1, flat))         # row-major flatten == torch view
    act = jnp.concatenate(rows, axis=0).astype(jnp.bfloat16)        # (N, FLAT)

    # fc1: ONE (N, FLAT) @ (FLAT, HIDDEN_PAD) contraction (K = 8192), f32 accumulate;
    # the whole batch shares a single w1 weight stream through the MXU.
    h = jnp.dot(act, w1_ref[...], preferred_element_type=jnp.float32)
    h = jnp.maximum(h + b1_ref[...], 0.0).astype(jnp.bfloat16)      # (N, HIDDEN_PAD)

    # fc2 (+ bias); hidden/class dims are 128-wide so the final store is lane-dense.
    o_ref[...] = (jnp.dot(h, w2_ref[...], preferred_element_type=jnp.float32)
                  + b2_ref[...])


# ---------------- jitted forward (PyTorch semantics) ----------------
@jax.jit
def simple_cnn_forward(x_nchw, kparams):
    wconv, bconv, w1, b1, w2, b2 = kparams

    # im2col in NCHW: 9 shifted views stacked tap-major -> (N, 27, H*W), K padded to 32.
    # (Patches are tiny here; at 224x224 build taps in-kernel instead, see TODO.)
    xpad = jnp.pad(x_nchw, ((0, 0), (0, 0), (1, 1), (1, 1)))
    taps = [xpad[:, :, ky:ky + H, kx:kx + W] for ky in range(3) for kx in range(3)]
    patches = jnp.stack(taps, axis=1).reshape(N, KPATCH, H * W)
    patches = jnp.pad(patches, ((0, 0), (0, KPATCH_PAD - KPATCH), (0, 0)))
    patches = patches.astype(jnp.bfloat16)

    # Single grid-less invocation: all operands land whole in VMEM, single-buffered
    # (no double-buffer waste on the resident weights), no per-TC weight duplication.
    vmem = pl.BlockSpec(memory_space=pltpu.MemorySpace.VMEM)
    out = pl.pallas_call(
        fused_cnn_kernel,
        out_shape=jax.ShapeDtypeStruct((N, NCLS_PAD), jnp.float32),
        in_specs=[vmem] * 7,
        out_specs=vmem,
    )(patches, wconv, bconv, w1, b1, w2, b2)

    # strip the exact zero padding of the class dim
    return out[:, :NUM_CLASSES]


# ---------------- parameter handling ----------------
def init_params(key):
    """Parameters in the exact PyTorch layouts of SimpleCNN."""
    ks = jax.random.split(key, 6)
    conv_w = jax.random.normal(ks[0], (C_OUT, C_IN, 3, 3), jnp.float32) * 0.1
    conv_b = jax.random.normal(ks[1], (C_OUT,), jnp.float32) * 0.1
    fc1_w = jax.random.normal(ks[2], (HIDDEN, FLAT), jnp.float32) * 0.01
    fc1_b = jax.random.normal(ks[3], (HIDDEN,), jnp.float32) * 0.01
    fc2_w = jax.random.normal(ks[4], (NUM_CLASSES, HIDDEN), jnp.float32) * 0.01
    fc2_b = jax.random.normal(ks[5], (NUM_CLASSES,), jnp.float32) * 0.01
    return (conv_w, conv_b, fc1_w, fc1_b, fc2_w, fc2_b)


def prepare_params(params):
    """One-time conversion (outside the per-forward jit) of PyTorch-layout params
    into kernel-ready layouts: no per-call transposes, matmul weights in bf16
    (f32 MXU accumulation keeps the result close to the f32 reference)."""
    conv_w, conv_b, fc1_w, fc1_b, fc2_w, fc2_b = params
    # (C_OUT, C_IN, 3, 3) -> (C_OUT, ky, kx, c_in) -> (C_OUT, 27) -> pad K to 32.
    # Column = tap*C_IN + c_in, matching the im2col tap order built in the wrapper.
    wconv = jnp.transpose(conv_w, (0, 2, 3, 1)).reshape(C_OUT, KPATCH)
    wconv = jnp.pad(wconv, ((0, 0), (0, KPATCH_PAD - KPATCH))).astype(jnp.bfloat16)
    bconv = conv_b.reshape(C_OUT, 1)                                   # f32
    # fc1: store transposed as (FLAT, HIDDEN_PAD); row index f = c*H*W + p matches
    # the kernel's row-major flatten of the (C_OUT, H*W) conv activation.
    w1 = jnp.pad(fc1_w.T, ((0, 0), (0, HIDDEN_PAD - HIDDEN))).astype(jnp.bfloat16)
    b1 = jnp.pad(fc1_b, (0, HIDDEN_PAD - HIDDEN)).reshape(1, HIDDEN_PAD)  # f32
    # fc2: transpose once, zero-pad to (128, 128); padded rows/cols contribute exactly 0.
    w2 = jnp.pad(fc2_w.T, ((0, HIDDEN_PAD - HIDDEN),
                           (0, NCLS_PAD - NUM_CLASSES))).astype(jnp.bfloat16)
    b2 = jnp.pad(fc2_b, (0, NCLS_PAD - NUM_CLASSES)).reshape(1, NCLS_PAD)  # f32
    return (wconv, bconv, w1, b1, w2, b2)


# ---------------- pure-JAX reference (exact PyTorch semantics, f32) ----------------
def reference_forward(x_nchw, params):
    conv_w, conv_b, fc1_w, fc1_b, fc2_w, fc2_b = params
    hi = jax.lax.Precision.HIGHEST
    y = jax.lax.conv_general_dilated(
        x_nchw, conv_w, window_strides=(1, 1), padding=((1, 1), (1, 1)),
        dimension_numbers=("NCHW", "OIHW", "NCHW"), precision=hi)
    y = jnp.maximum(y + conv_b.reshape(1, C_OUT, 1, 1), 0.0)
    y = y.reshape(N, FLAT)                                    # torch x.view(-1, 32*H*W)
    h = jnp.maximum(jnp.dot(y, fc1_w.T, precision=hi) + fc1_b, 0.0)
    return jnp.dot(h, fc2_w.T, precision=hi) + fc2_b


if __name__ == "__main__":
    key = jax.random.PRNGKey(0)
    k_x, k_p = jax.random.split(key)
    x = jax.random.normal(k_x, (N, C_IN, H, W), jnp.float32)   # NCHW like PyTorch
    params = init_params(k_p)
    kparams = prepare_params(params)       # one-time weight prep (bf16, no per-call w.T)

    out = jax.block_until_ready(simple_cnn_forward(x, kparams))
    assert out.shape == (N, NUM_CLASSES), out.shape

    ref = jax.block_until_ready(reference_forward(x, params))
    max_err = float(jnp.max(jnp.abs(out - ref)))
    # bf16 weights/activations with f32 accumulation vs. an all-f32 HIGHEST reference:
    # tolerance loosened accordingly (observed error is well below this).
    assert jnp.allclose(out, ref, rtol=5e-2, atol=1e-2), max_err

    print("KERNEL_OK")
</pallas_src>

<mosaic_0001>
module attributes {stable_mosaic.version = 11 : i64} {
  func.func @fused_cnn_kernel(%arg0: memref<2x32x256xbf16, #tpu.memory_space<vmem>>, %arg1: memref<32x32xbf16, #tpu.memory_space<vmem>>, %arg2: memref<32x1xf32, #tpu.memory_space<vmem>>, %arg3: memref<8192x128xbf16, #tpu.memory_space<vmem>>, %arg4: memref<1x128xf32, #tpu.memory_space<vmem>>, %arg5: memref<128x128xbf16, #tpu.memory_space<vmem>>, %arg6: memref<1x128xf32, #tpu.memory_space<vmem>>, %arg7: memref<2x128xf32, #tpu.memory_space<vmem>>) attributes {dimension_semantics = [], scalar_prefetch = 0 : i64, scratch_operands = 0 : i64, tpu.core_type = #tpu.core_type<tc>} {
    %c0 = arith.constant 0 : index
    %c0_0 = arith.constant 0 : index
    %0 = vector.load %arg1[%c0, %c0_0] : memref<32x32xbf16, #tpu.memory_space<vmem>>, vector<32x32xbf16>
    %c0_1 = arith.constant 0 : index
    %c0_2 = arith.constant 0 : index
    %c0_3 = arith.constant 0 : index
    %1 = vector.load %arg0[%c0_1, %c0_2, %c0_3] : memref<2x32x256xbf16, #tpu.memory_space<vmem>>, vector<1x32x256xbf16>
    %2 = vector.shape_cast %1 : vector<1x32x256xbf16> to vector<32x256xbf16>
    %cst = arith.constant dense<0.000000e+00> : vector<32x256xf32>
    %3 = tpu.matmul %0, %2, %cst {dimension_numbers = #tpu.dot_dimension_numbers<[1], [0], [0], [1], [0, 0, 1, 1], [], []>} : vector<32x32xbf16>, vector<32x256xbf16>, vector<32x256xf32> -> vector<32x256xf32>
    %c0_4 = arith.constant 0 : index
    %c0_5 = arith.constant 0 : index
    %4 = vector.load %arg2[%c0_4, %c0_5] : memref<32x1xf32, #tpu.memory_space<vmem>>, vector<32x1xf32>
    %5 = vector.broadcast %4 : vector<32x1xf32> to vector<32x256xf32>
    %6 = arith.addf %3, %5 : vector<32x256xf32>
    %cst_6 = arith.constant 0.000000e+00 : f32
    %7 = vector.broadcast %cst_6 : f32 to vector<32x256xf32>
    %8 = arith.maximumf %6, %7 : vector<32x256xf32>
    %9 = vector.shape_cast %8 : vector<32x256xf32> to vector<1x8192xf32>
    %c0_7 = arith.constant 0 : index
    %c0_8 = arith.constant 0 : index
    %10 = vector.load %arg1[%c0_7, %c0_8] : memref<32x32xbf16, #tpu.memory_space<vmem>>, vector<32x32xbf16>
    %c1 = arith.constant 1 : index
    %c0_9 = arith.constant 0 : index
    %c0_10 = arith.constant 0 : index
    %11 = vector.load %arg0[%c1, %c0_9, %c0_10] : memref<2x32x256xbf16, #tpu.memory_space<vmem>>, vector<1x32x256xbf16>
    %12 = vector.shape_cast %11 : vector<1x32x256xbf16> to vector<32x256xbf16>
    %cst_11 = arith.constant dense<0.000000e+00> : vector<32x256xf32>
    %13 = tpu.matmul %10, %12, %cst_11 {dimension_numbers = #tpu.dot_dimension_numbers<[1], [0], [0], [1], [0, 0, 1, 1], [], []>} : vector<32x32xbf16>, vector<32x256xbf16>, vector<32x256xf32> -> vector<32x256xf32>
    %c0_12 = arith.constant 0 : index
    %c0_13 = arith.constant 0 : index
    %14 = vector.load %arg2[%c0_12, %c0_13] : memref<32x1xf32, #tpu.memory_space<vmem>>, vector<32x1xf32>
    %15 = vector.broadcast %14 : vector<32x1xf32> to vector<32x256xf32>
    %16 = arith.addf %13, %15 : vector<32x256xf32>
    %cst_14 = arith.constant 0.000000e+00 : f32
    %17 = vector.broadcast %cst_14 : f32 to vector<32x256xf32>
    %18 = arith.maximumf %16, %17 : vector<32x256xf32>
    %19 = vector.shape_cast %18 : vector<32x256xf32> to vector<1x8192xf32>
    %20 = tpu.concatenate %9, %19 in 0 : vector<1x8192xf32>, vector<1x8192xf32> -> vector<2x8192xf32>
    %21 = arith.truncf %20 : vector<2x8192xf32> to vector<2x8192xbf16>
    %c0_15 = arith.constant 0 : index
    %c0_16 = arith.constant 0 : index
    %22 = vector.load %arg3[%c0_15, %c0_16] : memref<8192x128xbf16, #tpu.memory_space<vmem>>, vector<8192x128xbf16>
    %cst_17 = arith.constant dense<0.000000e+00> : vector<2x128xf32>
    %23 = tpu.matmul %21, %22, %cst_17 {dimension_numbers = #tpu.dot_dimension_numbers<[1], [0], [0], [1], [0, 0, 1, 1], [], []>} : vector<2x8192xbf16>, vector<8192x128xbf16>, vector<2x128xf32> -> vector<2x128xf32>
    %c0_18 = arith.constant 0 : index
    %c0_19 = arith.constant 0 : index
    %24 = vector.load %arg4[%c0_18, %c0_19] : memref<1x128xf32, #tpu.memory_space<vmem>>, vector<1x128xf32>
    %25 = vector.broadcast %24 : vector<1x128xf32> to vector<2x128xf32>
    %26 = arith.addf %23, %25 : vector<2x128xf32>
    %cst_20 = arith.constant 0.000000e+00 : f32
    %27 = vector.broadcast %cst_20 : f32 to vector<2x128xf32>
    %28 = arith.maximumf %26, %27 : vector<2x128xf32>
    %29 = arith.truncf %28 : vector<2x128xf32> to vector<2x128xbf16>
    %c0_21 = arith.constant 0 : index
    %c0_22 = arith.constant 0 : index
    %30 = vector.load %arg5[%c0_21, %c0_22] : memref<128x128xbf16, #tpu.memory_space<vmem>>, vector<128x128xbf16>
    %cst_23 = arith.constant dense<0.000000e+00> : vector<2x128xf32>
    %31 = tpu.matmul %29, %30, %cst_23 {dimension_numbers = #tpu.dot_dimension_numbers<[1], [0], [0], [1], [0, 0, 1, 1], [], []>} : vector<2x128xbf16>, vector<128x128xbf16>, vector<2x128xf32> -> vector<2x128xf32>
    %c0_24 = arith.constant 0 : index
    %c0_25 = arith.constant 0 : index
    %32 = vector.load %arg6[%c0_24, %c0_25] : memref<1x128xf32, #tpu.memory_space<vmem>>, vector<1x128xf32>
    %33 = vector.broadcast %32 : vector<1x128xf32> to vector<2x128xf32>
    %34 = arith.addf %31, %33 : vector<2x128xf32>
    %c0_26 = arith.constant 0 : index
    %c0_27 = arith.constant 0 : index
    %35 = vector.load %arg7[%c0_26, %c0_27] : memref<2x128xf32, #tpu.memory_space<vmem>>, vector<2x128xf32>
    tpu.vector_store %arg7[%c0_26, %c0_27], %34 {strides = array<i32>} : memref<2x128xf32, #tpu.memory_space<vmem>>, vector<2x128xf32>,
    return
  }
}

</mosaic_0001>

<bundles_post_ra>
// kernel: simple_cnn_forward.1
= control target key start
LH: loop header
LB: loop body
LE: loop exit
PB: predicated region body
PF: predicated region fallthrough
CT: control target
= control target key end

     0   :  { %12 = vsyncpa [#allocation3], 0  ;;  %s9580_s0 = inlined_call_operand.vmem [shape: bf16[2,32,256], index: 0, kind: input, shape index: {}]   ;;  %s9581_s1 = inlined_call_operand.hbm [shape: bf16[32,32], index: 1, kind: input, shape index: {}]   ;;  %s9582_s2 = inlined_call_operand.vmem [shape: f32[32,1], index: 2, kind: input, shape index: {}]   ;;  %s9583_s3 = inlined_call_operand.hbm [shape: bf16[8192,128], index: 3, kind: input, shape index: {}]   ;;  %s9584_s4 = inlined_call_operand.hbm [shape: f32[1,128], index: 4, kind: input, shape index: {}]   ;;  %s9585_s5 = inlined_call_operand.hbm [shape: bf16[128,128], index: 5, kind: input, shape index: {}]   ;;  %s9586_s6 = inlined_call_operand.hbm [shape: f32[1,128], index: 6, kind: input, shape index: {}]   ;;  %s9587_s7 = inlined_call_operand.hbm [shape: f32[2,128], index: 7, kind: output, shape index: {}]  }
   0x1   :  { %13 = vsyncpa [#allocation6], 0 }
   0x2   :  { %14 = vsyncpa [#allocation9], 0 }
   0x3   :  { %15 = vsyncpa [#allocation4], 0  ;;  %s8728_s24 = smov [#allocation5]   ;;  %s8729_s26 = smov [#allocation8]  }
   0x4   :  { %s37_s25 = sshll.u32 %s8728_s24, 4  ;;  %s59_s27 = sshll.u32 %s8729_s26, 4  ;;  %s38_s25 = int_to_ptr.vmem [resolvable:$true] %s37_s25  ;;  %s8780_s27 = int_to_ptr.vmem [resolvable:$true] %s59_s27 }
   0x5   :  { %s8588_s30 = scalar_lea.hbm %s9583_s3, 65536 }
   0x6   :  { %p8589_p0 = scmp.ne.s32.totalorder %s9583_s3, %s8588_s30  ;;  %p8592_p1 = scmp.lt.u32.totalorder %s8588_s30, %s9583_s3 }
   0x8   :  { %p8594_p2 = pnand %p8592_p1, %p8589_p0 }
   0xa   :  { %8597 = shalt.err (!%p8594_p2)
}
   0xb   :  { %s8598_s12 = scalar_lea.vmem %s38_s25, 65536  ;;  %p8603_p4 = scmp.lt.s32.totalorder %s38_s25, %s38_s25 }
   0xc   :  { %p8599_p3 = scmp.ne.s32.totalorder %s38_s25, %s8598_s12  ;;  %p8604_p5 = scmp.lt.s32.totalorder %s8598_s12, %s8598_s12 }
   0xe   :  { %p8605_p6 = por %p8604_p5, %p8603_p4 }
  0x10   :  { %p8606_p7 = pnand %p8605_p6, %p8599_p3 }
  0x12   :  { %8609 = shalt.err (!%p8606_p7)
}
  0x13   :  { %s8730_s13 = smov 64   ;;  %s8731_s14 = smov 4  }
  0x14   :  { %43 = dma.hbm_to_vmem [thread:$0]  %s9583_s3, 65536, %s38_s25, [#allocation6], %s8730_s13, %s8730_s13, %s8731_s14  }
  0x15   :  { %s8610_s19 = scalar_lea.hbm %s9585_s5, 1024 }
  0x16   :  { %p8611_p8 = scmp.ne.s32.totalorder %s9585_s5, %s8610_s19  ;;  %p8614_p9 = scmp.lt.u32.totalorder %s8610_s19, %s9585_s5 }
  0x18   :  { %p8616_p10 = pnand %p8614_p9, %p8611_p8 }
  0x1a   :  { %8619 = shalt.err (!%p8616_p10)
}
  0x1b   :  { %s8620_s24 = scalar_lea.vmem %s8780_s27, 1024  ;;  %p8625_p12 = scmp.lt.s32.totalorder %s8780_s27, %s8780_s27 }
  0x1c   :  { %p8621_p11 = scmp.ne.s32.totalorder %s8780_s27, %s8620_s24  ;;  %p8626_p13 = scmp.lt.s32.totalorder %s8620_s24, %s8620_s24 }
  0x1e   :  { %p8627_p0 = por %p8626_p13, %p8625_p12 }
  0x20   :  { %p8628_p1 = pnand %p8627_p0, %p8621_p11 }
  0x22   :  { %8631 = shalt.err (!%p8628_p1)
}
  0x23   :  { %65 = dma.hbm_to_vmem [thread:$0]  %s9585_s5, 1024, %s8780_s27, [#allocation9], %s8730_s13, %s8730_s13, %s8731_s14  }
  0x24   :  { %s8732_s26 = smov [#allocation2]   ;;  %s8733_s29 = smov [#allocation7]  }
  0x25   :  { %s23_s28 = sshll.u32 %s8732_s26, 4  ;;  %s50_s30 = sshll.u32 %s8733_s29, 4  ;;  %s24_s28 = int_to_ptr.vmem [resolvable:$true] %s23_s28  ;;  %s51_s30 = int_to_ptr.vmem [resolvable:$true] %s50_s30 }
  0x26   :  { %s8632_s10 = scalar_lea.hbm %s9581_s1, 256 }
  0x27   :  { %p8633_p2 = scmp.ne.s32.totalorder %s9581_s1, %s8632_s10  ;;  %p8636_p3 = scmp.lt.u32.totalorder %s8632_s10, %s9581_s1 }
  0x29   :  { %p8638_p4 = pnand %p8636_p3, %p8633_p2 }
  0x2b   :  { %8641 = shalt.err (!%p8638_p4)
}
  0x2c   :  { %s8642_s5 = scalar_lea.vmem %s24_s28, 256  ;;  %p8647_p6 = scmp.lt.s32.totalorder %s24_s28, %s24_s28 }
  0x2d   :  { %p8643_p5 = scmp.ne.s32.totalorder %s24_s28, %s8642_s5  ;;  %p8648_p7 = scmp.lt.s32.totalorder %s8642_s5, %s8642_s5 }
  0x2f   :  { %p8649_p8 = por %p8648_p7, %p8647_p6 }
  0x31   :  { %p8650_p9 = pnand %p8649_p8, %p8643_p5 }
  0x33   :  { %8653 = shalt.err (!%p8650_p9)
}
  0x34   :  { %29 = dma.hbm_to_vmem [thread:$0]  %s9581_s1, 256, %s24_s28, [#allocation3], %s8730_s13, %s8730_s13, %s8731_s14  }
  0x35   :  { %s8654_s20 = scalar_lea.hbm %s9584_s4, 16 }
  0x36   :  { %p8655_p10 = scmp.ne.s32.totalorder %s9584_s4, %s8654_s20  ;;  %p8658_p11 = scmp.lt.u32.totalorder %s8654_s20, %s9584_s4 }
  0x38   :  { %p8660_p12 = pnand %p8658_p11, %p8655_p10 }
  0x3a   :  { %8663 = shalt.err (!%p8660_p12)
}
  0x3b   :  { %s8664_s3 = scalar_lea.vmem %s51_s30, 16  ;;  %s8668_s25 = scalar_lea.vmem %s51_s30, 32 }
  0x3c   :  { %p8665_p13 = scmp.ne.s32.totalorder %s51_s30, %s8664_s3  ;;  %p8669_p0 = scmp.lt.s32.totalorder %s51_s30, %s51_s30 }
  0x3d   :  { %p8670_p1 = scmp.lt.s32.totalorder %s8668_s25, %s8664_s3 }
  0x3f   :  { %p8671_p2 = por %p8670_p1, %p8669_p0 }
  0x41   :  { %p8672_p3 = pnand %p8671_p2, %p8665_p13 }
  0x43   :  { %8675 = shalt.err (!%p8672_p3)
}
  0x44   :  { %53 = dma.hbm_to_vmem [thread:$0]  %s9584_s4, 16, %s51_s30, [#allocation6]  }
  0x45   :  { %s8734_s14 = smov [#allocation10]   ;;  %s8676_s8 = scalar_lea.hbm %s9586_s6, 16 }
  0x46   :  { %s72_s26 = sshll.u32 %s8734_s14, 4  ;;  %p8677_p4 = scmp.ne.s32.totalorder %s9586_s6, %s8676_s8  ;;  %s73_s26 = int_to_ptr.vmem [resolvable:$true] %s72_s26 }
  0x47   :  { %p8680_p5 = scmp.lt.u32.totalorder %s8676_s8, %s9586_s6 }
  0x49   :  { %p8682_p6 = pnand %p8680_p5, %p8677_p4 }
  0x4b   :  { %8685 = shalt.err (!%p8682_p6)
}
  0x4c   :  { %s8686_s15 = scalar_lea.vmem %s73_s26, 16  ;;  %s8690_s4 = scalar_lea.vmem %s73_s26, 32 }
  0x4d   :  { %p8687_p7 = scmp.ne.s32.totalorder %s73_s26, %s8686_s15  ;;  %p8691_p8 = scmp.lt.s32.totalorder %s73_s26, %s73_s26 }
  0x4e   :  { %p8692_p9 = scmp.lt.s32.totalorder %s8690_s4, %s8686_s15 }
  0x50   :  { %p8693_p10 = por %p8692_p9, %p8691_p8 }
  0x52   :  { %p8694_p11 = pnand %p8693_p10, %p8687_p7 }
  0x54   :  { %8697 = shalt.err (!%p8694_p11)
}
  0x55   :  { %75 = dma.hbm_to_vmem [thread:$0]  %s9586_s6, 16, %s73_s26, [#allocation9]  }
  0x56   :  { %8720 = dma.done.wait [#allocation3], 256  }
  0x57   :  { %8721 = vsyncadd [#allocation3], 4294967040 }
  0x58   :  { %8722 = dma.done.wait [#allocation6], 65552  }
  0x59   :  { %8723 = vsyncadd [#allocation6], 4294901744 }
  0x5a   :  { %8724 = dma.done.wait [#allocation9], 1040  }
  0x5b   :  { %8725 = vsyncadd [#allocation9], 4294966256  ;;  %v8735_v0 = vmov 0   ;;  %v8054_v1 = vld [vmem:[%s9580_s0 + $0x4] ss:$8 sps:$4 sm:$0xff]   ;;  %vm154_vm0 = vcmask 261120   ;;  %v249_v53 = vlaneseq }
  0x5c   :  { %193 = vmatprep.mubr.bf16.mxu1 %v8735_v0  ;;  %8052 = vset.pattern.permute.xlu0 %v8735_v0  ;;  %v8056_v2 = vld [vmem:[%s9580_s0] ss:$8 sps:$4 sm:$0xff]   ;;  %v8057_v3 = vld [vmem:[%s9580_s0 + $0x14] ss:$8 sps:$4 sm:$0xff]   ;;  %v8059_v4 = vld [vmem:[%s9580_s0 + $0x10] ss:$8 sps:$4 sm:$0xff]  }
  0x5d   :  { %8053 = vset.pattern.permute.xlu1 %v8735_v0  ;;  %161 = vmatprep.subr.bf16.mxu1 %v8054_v1  ;;  %v8063_v5 = vld [vmem:[%s9580_s0 + $0x24] ss:$8 sps:$4 sm:$0xff]   ;;  %v8061_v7 = vld [vmem:[%s9580_s0 + $0x20] ss:$8 sps:$4 sm:$0xff]   ;;  %v8067_v8 = vld [vmem:[%s9580_s0 + $0x34] ss:$8 sps:$4 sm:$0xff]  }
  0x5e   :  { %162 = vmatpush1.bf16.msra.mxu1 %v8056_v2  ;;  %v8060_v6 = vld [vmem:[#allocation2] sm:$0xff]   ;;  %v101_v10 = vld [vmem:[%s9582_s2 + $0x8] sm:$0xff]  ;;  %v102_v11 = vld [vmem:[%s9582_s2 + $0x10] sm:$0xff]  ;;  %v8736_v51 = vmov 1935823168   ;;  %v250_v1 = vshrl.u32 %v249_v53, 7 }
  0x5f   :  { %163 = vmatprep.subr.bf16.mxu1 %v8057_v3  ;;  %v100_v9 = vld [vmem:[%s9582_s2] sm:$0xff]  ;;  %v103_v12 = vld [vmem:[%s9582_s2 + $0x18] sm:$0xff]  ;;  %116 = vperm.xlu1 %8053, %v102_v11   ;;  %v8068_v14 = vld [vmem:[#allocation5 + $0x40] sm:$0xff]   ;;  %v247_v52 = vunpack.c.l.s4 %v8736_v51  ;;  %vm1124_vm1 = vcmask 1040384   ;;  %vm8738_vm2 = vmmov 0  }
  0x60   :  { %106 = vperm.xlu0 %8052, %v100_v9   ;;  %v8065_v13 = vld [vmem:[%s9580_s0 + $0x30] ss:$8 sps:$4 sm:$0xff]   ;;  %v8064_v16 = vld [vmem:[#allocation2 + $0x8] sm:$0xff]   ;;  %7307 = vmatprep.subr.bf16.mxu0 %v8068_v14  ;;  %v8076_v23 = vld [vmem:[#allocation5 + $0x50] sm:$0xff]   ;;  %v8903_v14 = vsub.s32 1, %v250_v1  ;;  %s8739_s0 = smov [#allocation11]  }
  0x61   :  { %v8069_v15 = vld [vmem:[#allocation5 + $0xc0] sm:$0xff]   ;;  %v8072_v19 = vld [vmem:[#allocation5 + $0x48] sm:$0xff]   ;;  %v8077_v24 = vld [vmem:[#allocation5 + $0xd0] sm:$0xff]   ;;  %s6756_s2 = sshll.u32 %s8739_s0, 4  ;;  %s6757_s2 = int_to_ptr.vmem [resolvable:$true] %s6756_s2 }
  0x62   :  { %164 = vmatpush1.bf16.msra.mxu1 %v8059_v4  ;;  %v8070_v17 = vld [vmem:[#allocation5] sm:$0xff]   ;;  %v8073_v20 = vld [vmem:[#allocation5 + $0xc8] sm:$0xff]   ;;  %v8078_v25 = vld [vmem:[#allocation5 + $0x10] sm:$0xff]   ;;  %s8698_s15 = scalar_lea.vmem %s6757_s2, 32  ;;  %p8703_p13 = scmp.lt.s32.totalorder %s6757_s2, %s6757_s2 }
  0x63   :  { %327 = vmatprep.subr.bf16.mxu1 %v8063_v5  ;;  %121 = vperm.xlu1 %8053, %v103_v12   ;;  %v8071_v18 = vld [vmem:[#allocation5 + $0x80] sm:$0xff]   ;;  %v8074_v21 = vld [vmem:[#allocation5 + $0x8] sm:$0xff]   ;;  %v8079_v26 = vld [vmem:[#allocation5 + $0x90] sm:$0xff]   ;;  %p8699_p12 = scmp.ne.s32.totalorder %s6757_s2, %s8698_s15  ;;  %p8704_p0 = scmp.lt.s32.totalorder %s8698_s15, %s8698_s15 }
  0x64   :  { %111 = vperm.xlu0 %8052, %v101_v10   ;;  %7308 = vmatpush3.bf16.msra.mxu0 %v8070_v17  ;;  %v8075_v22 = vld [vmem:[#allocation5 + $0x88] sm:$0xff]   ;;  %v8080_v27 = vld [vmem:[#allocation5 + $0x58] sm:$0xff]   ;;  %v8084_v31 = vld [vmem:[#allocation5 + $0x60] sm:$0xff]  }
  0x65   :  { %6773 = vmatmul.mubr.msk.bf16.vlgmr.msra.gmra.mrb[0].mxu1 %vm154_vm0, %v8060_v6  ;;  %7309 = vmatprep.subr.bf16.mxu0 %v8072_v19  ;;  %v8081_v28 = vld [vmem:[#allocation5 + $0xd8] sm:$0xff]   ;;  %v8085_v32 = vld [vmem:[#allocation5 + $0xe0] sm:$0xff]   ;;  %v8088_v35 = vld [vmem:[#allocation5 + $0x68] sm:$0xff]   ;;  %v8912_v19 = vsub.s32 3, %v250_v1  ;;  %p8705_p1 = por %p8704_p0, %p8703_p13 }
  0x66   :  { %328 = vmatpush1.bf16.msra.mxu1 %v8061_v7  ;;  %203 = vmatprep.mubr.bf16.mxu1 %v8735_v0  ;;  %v8082_v29 = vld [vmem:[#allocation5 + $0x18] sm:$0xff]   ;;  %v8086_v33 = vld [vmem:[#allocation5 + $0x20] sm:$0xff]   ;;  %v8089_v36 = vld [vmem:[#allocation5 + $0xe8] sm:$0xff]  }
  0x67   :  { %329 = vmatprep.subr.bf16.mxu1 %v8067_v8  ;;  %v8083_v30 = vld [vmem:[#allocation5 + $0x98] sm:$0xff]   ;;  %v8087_v34 = vld [vmem:[#allocation5 + $0xa0] sm:$0xff]   ;;  %v8090_v37 = vld [vmem:[#allocation5 + $0x28] sm:$0xff]   ;;  %p8706_p2 = pnand %p8705_p1, %p8699_p12 }
  0x68   :  { %7310 = vmatpush3.bf16.msra.mxu0 %v8074_v21  ;;  %v8091_v38 = vld [vmem:[#allocation5 + $0xa8] sm:$0xff]   ;;  %v8092_v39 = vld [vmem:[#allocation5 + $0x70] sm:$0xff]   ;;  %v8096_v43 = vld [vmem:[#allocation5 + $0x78] sm:$0xff]  }
  0x69   :  { %7311 = vmatprep.subr.bf16.mxu0 %v8076_v23  ;;  %v8093_v40 = vld [vmem:[#allocation5 + $0xf0] sm:$0xff]   ;;  %v8097_v44 = vld [vmem:[#allocation5 + $0xf8] sm:$0xff]   ;;  %v8100_v47 = vld [vmem:[#allocation5 + $0x140] sm:$0xff]  }
  0x6a   :  { %330 = vmatpush1.bf16.msra.mxu1 %v8065_v13  ;;  %v8094_v41 = vld [vmem:[#allocation5 + $0x30] sm:$0xff]   ;;  %v8098_v45 = vld [vmem:[#allocation5 + $0x38] sm:$0xff]   ;;  %v8101_v48 = vld [vmem:[#allocation5 + $0x1c0] sm:$0xff]  }
  0x6b   :  { %7329 = vmatprep.subr.bf16.mxu1 %v8069_v15  ;;  %v8095_v42 = vld [vmem:[#allocation5 + $0xb0] sm:$0xff]   ;;  %v8099_v46 = vld [vmem:[#allocation5 + $0xb8] sm:$0xff]  }
  0x6c   :  { %7312 = vmatpush3.bf16.msra.mxu0 %v8078_v25  ;;  %v8916_v25 = vsub.s32 0, %v250_v1 }
  0x6d   :  { %6774 = vmatmul.mubr.msk.bf16.gmra.mrb[4].mxu1 %vm154_vm0, %v8064_v16  ;;  %7313 = vmatprep.subr.bf16.mxu0 %v8080_v27 }
  0x6e   :  { %359 = vmatprep.mubr.bf16.mxu1 %v8735_v0 }
  0x70   :  { %7314 = vmatpush3.bf16.msra.mxu0 %v8082_v29 }
  0x71   :  { %7315 = vmatprep.subr.bf16.mxu0 %v8084_v31 }
  0x74   :  { %7316 = vmatpush3.bf16.msra.mxu0 %v8086_v33 }
  0x75   :  { %6783 = vmatmul.mubr.msk.bf16.vlgmr.msra.gmra.mrb[8].mxu1 %vm154_vm0, %v8060_v6  ;;  %7317 = vmatprep.subr.bf16.mxu0 %v8088_v35 }
  0x76   :  { %369 = vmatprep.mubr.bf16.mxu1 %v8735_v0  ;;  %7330 = vmatpush3.bf16.msra.mxu1 %v8071_v18  ;;  %v248_v0 = vunpack.c.0.s8 %v247_v52 }
  0x77   :  { %7331 = vmatprep.subr.bf16.mxu1 %v8073_v20 }
  0x78   :  { %7318 = vmatpush3.bf16.msra.mxu0 %v8090_v37  ;;  %v8898_v7 = vsub.s32 %v248_v0, %v250_v1 }
  0x79   :  { %7319 = vmatprep.subr.bf16.mxu0 %v8092_v39 }
  0x7a   :  { %7332 = vmatpush3.bf16.msra.mxu1 %v8075_v22 }
  0x7b   :  { %7333 = vmatprep.subr.bf16.mxu1 %v8077_v24 }
  0x7c   :  { %7320 = vmatpush3.bf16.msra.mxu0 %v8094_v41  ;;  %v8933_v41 = vsub.s32 4, %v250_v1 }
  0x7d   :  { %6784 = vmatmul.mubr.msk.bf16.gmra.mrb[12].mxu1 %vm154_vm0, %v8064_v16  ;;  %7321 = vmatprep.subr.bf16.mxu0 %v8096_v43 }
  0x7e   :  { %7334 = vmatpush3.bf16.msra.mxu1 %v8079_v26  ;;  %v8918_v26 = vsub.s32 2, %v250_v1 }
  0x7f   :  { %7335 = vmatprep.subr.bf16.mxu1 %v8081_v28  ;;  %v8920_v28 = vsub.s32 5, %v250_v1 }
  0x80   :  { %7322 = vmatpush3.bf16.msra.mxu0 %v8098_v45 }
  0x81   :  { %7351 = vmatprep.subr.bf16.mxu0 %v8100_v47 }
  0x82   :  { %7336 = vmatpush3.bf16.msra.mxu1 %v8083_v30 }
  0x83   :  { %7337 = vmatprep.subr.bf16.mxu1 %v8085_v32  ;;  %v8922_v32 = vsub.s32 7, %v250_v1 }
  0x86   :  { %7338 = vmatpush3.bf16.msra.mxu1 %v8087_v34 }
  0x87   :  { %7339 = vmatprep.subr.bf16.mxu1 %v8089_v36 }
  0x8a   :  { %7340 = vmatpush3.bf16.msra.mxu1 %v8091_v38 }
  0x8b   :  { %7341 = vmatprep.subr.bf16.mxu1 %v8093_v40 }
  0x8e   :  { %7342 = vmatpush3.bf16.msra.mxu1 %v8095_v42 }
  0x8f   :  { %7343 = vmatprep.subr.bf16.mxu1 %v8097_v44 }
  0x92   :  { %7344 = vmatpush3.bf16.msra.mxu1 %v8099_v46  ;;  %v8941_v46 = vsub.s32 6, %v250_v1 }
  0x93   :  { %7373 = vmatprep.subr.bf16.mxu1 %v8101_v48 }
  0xde   :  { %v8896_v59 = vpop.permute.xlu1 %116 }
  0xdf   :  { %v107_v49 = vpop.permute.xlu0 %106 }
  0xe2   :  { %v8900_v11 = vpop.permute.xlu1 %121 }
  0xe3   :  { %v112_v54 = vpop.permute.xlu0 %111 }
 0x138   :  { %v195_v50 = vpop.f32.mrb[0].mxu1 }
 0x139   :  { %v196_v55 = vadd.f32 %v195_v50, %v107_v49  ;;  %v197_v56 = vpop.f32.mrb[1].mxu1 }
 0x13a   :  { %v198_v57 = vadd.f32 %v197_v56, %v107_v49  ;;  %v199_v58 = vpop.f32.mrb[2].mxu1 }
 0x13b   :  { %v214_v60 = vmax.f32 %v196_v55, 0.0  ;;  %v200_v61 = vadd.f32 %v199_v58, %v112_v54  ;;  %v201_v62 = vpop.f32.mrb[3].mxu1 }
 0x13c   :  { %v215_v63 = vmax.f32 %v198_v57, 0.0  ;;  %v202_v2 = vadd.f32 %v201_v62, %v112_v54 }
 0x13d   :  { %v216_v3 = vmax.f32 %v200_v61, 0.0 }
 0x13e   :  { %v230_v4 = vcombine.low %v214_v60, %v215_v63  ;;  %v231_v5 = vcombine.high %v214_v60, %v215_v63  ;;  %v217_v6 = vmax.f32 %v202_v2, 0.0 }
 0x140   :  { %v232_v8 = vcombine.low %v216_v3, %v217_v6  ;;  %v233_v9 = vcombine.high %v216_v3, %v217_v6  ;;  %v205_v10 = vpop.f32.mrb[4].mxu1  ;;  %v8925_v33 = vrot.slane %v230_v4, %v8898_v7  ;;  %v8944_v47 = vrot.slane %v231_v5, %v8898_v7 }
 0x141   :  { %v206_v12 = vadd.f32 %v205_v10, %v8896_v59  ;;  %v207_v13 = vpop.f32.mrb[5].mxu1 }
 0x142   :  { %v8906_v15 = vrot.slane %v232_v8, %v8898_v7  ;;  %v8909_v16 = vrot.slane %v233_v9, %v8898_v7  ;;  %v208_v17 = vadd.f32 %v207_v13, %v8896_v59  ;;  %v209_v18 = vpop.f32.mrb[6].mxu1  ;;  %v483_v55 = vrot.slane %v8925_v33, %v8903_v14 }
 0x143   :  { %v218_v20 = vmax.f32 %v206_v12, 0.0  ;;  %v210_v21 = vadd.f32 %v209_v18, %v8900_v11  ;;  %v211_v22 = vpop.f32.mrb[7].mxu1  ;;  %v491_v57 = vrot.slane %v8925_v33, %v8912_v19  ;;  %v487_v58 = vrot.slane %v8925_v33, %v8918_v26 }
 0x144   :  { %v219_v23 = vmax.f32 %v208_v17, 0.0  ;;  %v212_v24 = vadd.f32 %v211_v22, %v8900_v11  ;;  %v507_v63 = vrot.slane %v8925_v33, %v8922_v32  ;;  %v495_v0 = vrot.slane %v8925_v33, %v8933_v41 }
 0x145   :  { %v220_v27 = vmax.f32 %v210_v21, 0.0  ;;  %v503_v1 = vrot.slane %v8925_v33, %v8941_v46  ;;  %v515_v2 = vrot.slane %v8944_v47, %v8903_v14  ;;  %v523_v8 = vrot.slane %v8944_v47, %v8912_v19 }
 0x146   :  { %v234_v29 = vcombine.low %v218_v20, %v219_v23  ;;  %v235_v30 = vcombine.high %v218_v20, %v219_v23  ;;  %v221_v31 = vmax.f32 %v212_v24, 0.0  ;;  %v511_v13 = vrot.slane %v8944_v47, %v8916_v25 }
 0x147   :  { %v519_v17 = vrot.slane %v8944_v47, %v8918_v26 }
 0x148   :  { %v8928_v34 = vrot.slane %v234_v29, %v8898_v7  ;;  %v8931_v35 = vrot.slane %v235_v30, %v8898_v7  ;;  %v236_v36 = vcombine.low %v220_v27, %v221_v31  ;;  %v237_v37 = vcombine.high %v220_v27, %v221_v31  ;;  %v361_v38 = vpop.f32.mrb[8].mxu1 }
 0x149   :  { %v362_v39 = vadd.f32 %v361_v38, %v107_v49  ;;  %v363_v40 = vpop.f32.mrb[9].mxu1 }
 0x14a   :  { %v8936_v42 = vrot.slane %v236_v36, %v8898_v7  ;;  %v8939_v43 = vrot.slane %v237_v37, %v8898_v7  ;;  %v364_v44 = vadd.f32 %v363_v40, %v107_v49  ;;  %v365_v45 = vpop.f32.mrb[10].mxu1  ;;  %v479_v49 = vrot.slane %v8925_v33, %v8916_v25 }
 0x14b   :  { %v380_v48 = vmax.f32 %v362_v39, 0.0  ;;  %v366_v50 = vadd.f32 %v365_v45, %v112_v54  ;;  %v367_v51 = vpop.f32.mrb[11].mxu1 }
 0x14c   :  { %v381_v52 = vmax.f32 %v364_v44, 0.0  ;;  %v368_v53 = vadd.f32 %v367_v51, %v112_v54  ;;  %v499_v54 = vrot.slane %v8925_v33, %v8920_v28 }
 0x14d   :  { %v382_v56 = vmax.f32 %v366_v50, 0.0 }
 0x14e   :  { %v396_v60 = vcombine.low %v380_v48, %v381_v52  ;;  %v397_v61 = vcombine.high %v380_v48, %v381_v52  ;;  %v383_v62 = vmax.f32 %v368_v53, 0.0  ;;  %v8102_v48 = vld [vmem:[#allocation5 + $0x100] sm:$0xff]  }
 0x150   :  { %v8965_v3 = vrot.slane %v396_v60, %v8898_v7  ;;  %v398_v4 = vcombine.low %v382_v56, %v383_v62  ;;  %v399_v5 = vcombine.high %v382_v56, %v383_v62  ;;  %v371_v6 = vpop.f32.mrb[12].mxu1  ;;  %v8970_v9 = vrot.slane %v397_v61, %v8898_v7  ;;  %v8103_v56 = vld [vmem:[#allocation5 + $0x180] sm:$0xff]   ;;  %v8104_v60 = vld [vmem:[#allocation5 + $0x148] sm:$0xff]  }
 0x151   :  { %v372_v10 = vadd.f32 %v371_v6, %v8896_v59  ;;  %v373_v12 = vpop.f32.mrb[13].mxu1 }
 0x152   :  { %v8978_v18 = vrot.slane %v398_v4, %v8898_v7  ;;  %v8981_v20 = vrot.slane %v399_v5, %v8898_v7  ;;  %v374_v21 = vadd.f32 %v373_v12, %v8896_v59  ;;  %v375_v22 = vpop.f32.mrb[14].mxu1  ;;  %v811_v23 = vrot.slane %v8965_v3, %v8903_v14 }
 0x153   :  { %v384_v24 = vmax.f32 %v372_v10, 0.0  ;;  %v376_v27 = vadd.f32 %v375_v22, %v8900_v11  ;;  %v377_v29 = vpop.f32.mrb[15].mxu1  ;;  %v819_v30 = vrot.slane %v8965_v3, %v8912_v19  ;;  %v807_v31 = vrot.slane %v8965_v3, %v8916_v25  ;;  %v8106_v10 = vld [vmem:[#allocation5 + $0x108] sm:$0xff]  }
 0x154   :  { %v385_v36 = vmax.f32 %v374_v21, 0.0  ;;  %v378_v37 = vadd.f32 %v377_v29, %v8900_v11  ;;  %v1126_v38 = vsel %vm1124_vm1, %v483_v55, %v811_v23  ;;  %v815_v59 = vrot.slane %v8965_v3, %v8918_v26 }
 0x155   :  { %v386_v39 = vmax.f32 %v376_v27, 0.0  ;;  %v1190_v40 = vpack.c.bf16 %v1126_v38, %v1126_v38  ;;  %v1128_v44 = vsel %vm1124_vm1, %v491_v57, %v819_v30  ;;  %v1125_v45 = vsel %vm1124_vm1, %v479_v49, %v807_v31  ;;  %v8105_v57 = vld [vmem:[#allocation5 + $0x1c8] sm:$0xff]   ;;  %v8108_v30 = vld [vmem:[#allocation5 + $0x150] sm:$0xff]  }
 0x156   :  { %v400_v50 = vcombine.low %v384_v24, %v385_v36  ;;  %v401_v51 = vcombine.high %v384_v24, %v385_v36  ;;  %v387_v52 = vmax.f32 %v378_v37, 0.0  ;;  %v1192_v53 = vpack.c.bf16 %v1128_v44, %v1128_v44  ;;  %v8109_v36 = vld [vmem:[#allocation5 + $0x1d0] sm:$0xff]   ;;  %v8112_v44 = vld [vmem:[#allocation5 + $0x158] sm:$0xff]  }
 0x157   :  { %5388 = vmatprep.mubr.bf16.mxu0 %v1190_v40  ;;  %v1189_v11 = vpack.c.bf16 %v1125_v45, %v1125_v45  ;;  %v1127_v55 = vsel %vm1124_vm1, %v487_v58, %v815_v59  ;;  %v827_v61 = vrot.slane %v8965_v3, %v8920_v28  ;;  %v835_v62 = vrot.slane %v8965_v3, %v8922_v32  ;;  %v8110_v59 = vld [vmem:[#allocation5 + $0x110] sm:$0xff]  }
 0x158   :  { %v9003_v49 = vrot.slane %v400_v50, %v8898_v7  ;;  %v9006_v4 = vrot.slane %v401_v51, %v8898_v7  ;;  %v402_v5 = vcombine.low %v386_v39, %v387_v52  ;;  %v403_v6 = vcombine.high %v386_v39, %v387_v52  ;;  %5428 = vmatprep.mubr.bf16.mxu1 %v1192_v53  ;;  %v8111_v51 = vld [vmem:[#allocation5 + $0x190] sm:$0xff]   ;;  %v8113_v52 = vld [vmem:[#allocation5 + $0x1d8] sm:$0xff]  }
 0x159   :  { %5389 = vmatmul.mubr.bf16.vlgmr.msra.gmra.mrb[0].mxu0 %v1189_v11  ;;  %v1191_v12 = vpack.c.bf16 %v1127_v55, %v1127_v55  ;;  %v1130_v58 = vsel %vm1124_vm1, %v499_v54, %v827_v61  ;;  %v1132_v21 = vsel %vm1124_vm1, %v507_v63, %v835_v62  ;;  %v823_v22 = vrot.slane %v8965_v3, %v8933_v41 }
 0x15a   :  { %v9013_v23 = vrot.slane %v402_v5, %v8898_v7  ;;  %v9016_v24 = vrot.slane %v403_v6, %v8898_v7  ;;  %7352 = vmatpush3.bf16.msra.mxu0 %v8102_v48  ;;  %v1194_v27 = vpack.c.bf16 %v1130_v58, %v1130_v58  ;;  %v1196_v29 = vpack.c.bf16 %v1132_v21, %v1132_v21  ;;  %v8107_v7 = vld [vmem:[#allocation5 + $0x188] sm:$0xff]  }
 0x15b   :  { %5429 = vmatmul.mubr.bf16.vlgmr.msra.gmra.mrb[16].mxu1 %v1191_v12  ;;  %7353 = vmatprep.subr.bf16.mxu0 %v8104_v60  ;;  %v9022_v54 = vsel %vm1124_vm1, %v495_v0, %v823_v22  ;;  %v831_v63 = vrot.slane %v8965_v3, %v8941_v46  ;;  %v843_v31 = vrot.slane %v8970_v9, %v8903_v14 }
 0x15c   :  { %7374 = vmatpush3.bf16.msra.mxu1 %v8103_v56  ;;  %5468 = vmatprep.mubr.bf16.mxu0 %v1194_v27  ;;  %v851_v37 = vrot.slane %v8970_v9, %v8912_v19  ;;  %v839_v38 = vrot.slane %v8970_v9, %v8916_v25  ;;  %v531_v0 = vrot.slane %v8944_v47, %v8920_v28  ;;  %v8115_v27 = vld [vmem:[#allocation5 + $0x198] sm:$0xff]  }
 0x15d   :  { %5508 = vmatprep.mubr.bf16.mxu1 %v1196_v29  ;;  %7375 = vmatprep.subr.bf16.mxu1 %v8105_v57  ;;  %v9038_v3 = vsel %vm1124_vm1, %v503_v1, %v831_v63  ;;  %v9044_v39 = vsel %vm1124_vm1, %v515_v2, %v843_v31  ;;  %v847_v40 = vrot.slane %v8970_v9, %v8918_v26  ;;  %v8116_v57 = vld [vmem:[#allocation5 + $0x160] sm:$0xff]  }
 0x15e   :  { %7354 = vmatpush3.bf16.msra.mxu0 %v8106_v10  ;;  %v9052_v45 = vsel %vm1124_vm1, %v523_v8, %v851_v37  ;;  %v9058_v33 = vsel %vm1124_vm1, %v511_v13, %v839_v38  ;;  %v539_v1 = vrot.slane %v8944_v47, %v8922_v32  ;;  %v527_v2 = vrot.slane %v8944_v47, %v8933_v41  ;;  %v8117_v29 = vld [vmem:[#allocation5 + $0x1e0] sm:$0xff]  }
 0x15f   :  { %7355 = vmatprep.subr.bf16.mxu0 %v8108_v30  ;;  %v9068_v48 = vsel %vm1124_vm1, %v519_v17, %v847_v40  ;;  %v859_v8 = vrot.slane %v8970_v9, %v8920_v28  ;;  %v535_v13 = vrot.slane %v8944_v47, %v8941_v46  ;;  %v547_v50 = vrot.slane %v8906_v15, %v8903_v14  ;;  %v8114_v47 = vld [vmem:[#allocation5 + $0x118] sm:$0xff]   ;;  %v8120_v40 = vld [vmem:[#allocation5 + $0x168] sm:$0xff]  }
 0x160   :  { %7376 = vmatpush3.bf16.msra.mxu1 %v8107_v7  ;;  %v867_v53 = vrot.slane %v8970_v9, %v8922_v32  ;;  %v855_v56 = vrot.slane %v8970_v9, %v8933_v41  ;;  %v863_v17 = vrot.slane %v8970_v9, %v8941_v46  ;;  %v555_v60 = vrot.slane %v8906_v15, %v8912_v19 }
 0x161   :  { %7377 = vmatprep.subr.bf16.mxu1 %v8109_v36  ;;  %v9085_v11 = vsel %vm1124_vm1, %v531_v0, %v859_v8  ;;  %v875_v55 = vrot.slane %v8978_v18, %v8903_v14  ;;  %v883_v61 = vrot.slane %v8978_v18, %v8912_v19  ;;  %v871_v62 = vrot.slane %v8978_v18, %v8916_v25  ;;  %v8118_v36 = vld [vmem:[#allocation5 + $0x120] sm:$0xff]  }
 0x162   :  { %7356 = vmatpush3.bf16.msra.mxu0 %v8110_v59  ;;  %v9094_v9 = vsel %vm1124_vm1, %v539_v1, %v867_v53  ;;  %v9097_v5 = vsel %vm1124_vm1, %v527_v2, %v855_v56  ;;  %v9100_v6 = vsel %vm1124_vm1, %v535_v13, %v863_v17  ;;  %v543_v10 = vrot.slane %v8906_v15, %v8916_v25  ;;  %v8121_v53 = vld [vmem:[#allocation5 + $0x1e8] sm:$0xff]  }
 0x163   :  { %7357 = vmatprep.subr.bf16.mxu0 %v8112_v44  ;;  %v9105_v12 = vsel %vm1124_vm1, %v547_v50, %v875_v55  ;;  %v551_v58 = vrot.slane %v8906_v15, %v8918_v26  ;;  %v563_v21 = vrot.slane %v8906_v15, %v8920_v28  ;;  %v571_v22 = vrot.slane %v8906_v15, %v8922_v32 }
 0x164   :  { %7378 = vmatpush3.bf16.msra.mxu1 %v8111_v51  ;;  %v9114_v30 = vsel %vm1124_vm1, %v555_v60, %v883_v61  ;;  %v9117_v63 = vsel %vm1124_vm1, %v543_v10, %v871_v62  ;;  %v879_v31 = vrot.slane %v8978_v18, %v8918_v26  ;;  %v559_v7 = vrot.slane %v8906_v15, %v8933_v41  ;;  %v8122_v60 = vld [vmem:[#allocation5 + $0x128] sm:$0xff]  }
 0x165   :  { %7379 = vmatprep.subr.bf16.mxu1 %v8113_v52  ;;  %v891_v37 = vrot.slane %v8978_v18, %v8920_v28  ;;  %v899_v38 = vrot.slane %v8978_v18, %v8922_v32  ;;  %v567_v0 = vrot.slane %v8906_v15, %v8941_v46  ;;  %v579_v59 = vrot.slane %v8909_v16, %v8903_v14  ;;  %v8119_v52 = vld [vmem:[#allocation5 + $0x1a0] sm:$0xff]  }
 0x166   :  { %7358 = vmatpush3.bf16.msra.mxu0 %v8114_v47  ;;  %v9132_v44 = vsel %vm1124_vm1, %v551_v58, %v879_v31  ;;  %v887_v1 = vrot.slane %v8978_v18, %v8933_v41  ;;  %v895_v2 = vrot.slane %v8978_v18, %v8941_v46  ;;  %v907_v8 = vrot.slane %v8981_v20, %v8903_v14 }
 0x167   :  { %7359 = vmatprep.subr.bf16.mxu0 %v8116_v57  ;;  %v9141_v15 = vsel %vm1124_vm1, %v563_v21, %v891_v37  ;;  %v9144_v13 = vsel %vm1124_vm1, %v571_v22, %v899_v38  ;;  %v587_v50 = vrot.slane %v8909_v16, %v8912_v19  ;;  %v915_v51 = vrot.slane %v8981_v20, %v8912_v19  ;;  %v8124_v57 = vld [vmem:[#allocation5 + $0x170] sm:$0xff]  }
 0x168   :  { %7380 = vmatpush3.bf16.msra.mxu1 %v8115_v27  ;;  %v9151_v18 = vsel %vm1124_vm1, %v559_v7, %v887_v1  ;;  %v9154_v56 = vsel %vm1124_vm1, %v567_v0, %v895_v2  ;;  %v575_v17 = vrot.slane %v8909_v16, %v8916_v25  ;;  %v9159_v47 = vsel %vm1124_vm1, %v579_v59, %v907_v8  ;;  %v8125_v37 = vld [vmem:[#allocation5 + $0x1f0] sm:$0xff]  }
 0x169   :  { %7381 = vmatprep.subr.bf16.mxu1 %v8117_v29  ;;  %v9162_v55 = vsel %vm1124_vm1, %v587_v50, %v915_v51  ;;  %v583_v61 = vrot.slane %v8909_v16, %v8918_v26  ;;  %v595_v62 = vrot.slane %v8909_v16, %v8920_v28  ;;  %v903_v10 = vrot.slane %v8981_v20, %v8916_v25  ;;  %v8126_v1 = vld [vmem:[#allocation5 + $0x130] sm:$0xff]   ;;  %v8128_v50 = vld [vmem:[#allocation5 + $0x178] sm:$0xff]  }
 0x16a   :  { %7360 = vmatpush3.bf16.msra.mxu0 %v8118_v36  ;;  %v911_v58 = vrot.slane %v8981_v20, %v8918_v26  ;;  %v603_v21 = vrot.slane %v8909_v16, %v8922_v32  ;;  %v591_v22 = vrot.slane %v8909_v16, %v8933_v41  ;;  %v923_v27 = vrot.slane %v8981_v20, %v8920_v28  ;;  %v8123_v36 = vld [vmem:[#allocation5 + $0x1a8] sm:$0xff]  }
 0x16b   :  { %7361 = vmatprep.subr.bf16.mxu0 %v8120_v40  ;;  %v931_v29 = vrot.slane %v8981_v20, %v8922_v32  ;;  %v919_v31 = vrot.slane %v8981_v20, %v8933_v41  ;;  %v927_v7 = vrot.slane %v8981_v20, %v8941_v46  ;;  %v9185_v38 = vsel %vm1124_vm1, %v575_v17, %v903_v10  ;;  %v8129_v17 = vld [vmem:[#allocation5 + $0x1f8] sm:$0xff]  }
 0x16c   :  { %7382 = vmatpush3.bf16.msra.mxu1 %v8119_v52  ;;  %v9188_v0 = vsel %vm1124_vm1, %v583_v61, %v911_v58  ;;  %v599_v59 = vrot.slane %v8909_v16, %v8941_v46  ;;  %v939_v40 = vrot.slane %v9003_v49, %v8903_v14  ;;  %v9195_v2 = vsel %vm1124_vm1, %v595_v62, %v923_v27 }
 0x16d   :  { %7383 = vmatprep.subr.bf16.mxu1 %v8121_v53  ;;  %v9198_v20 = vsel %vm1124_vm1, %v603_v21, %v931_v29  ;;  %v611_v8 = vrot.slane %v8928_v34, %v8903_v14  ;;  %v9203_v51 = vsel %vm1124_vm1, %v591_v22, %v919_v31  ;;  %v8127_v53 = vld [vmem:[#allocation5 + $0x1b0] sm:$0xff]   ;;  %v619_v61 = vrot.slane %v8928_v34, %v8912_v19  ;;  %v8132_v29 = vld [vmem:[#allocation5 + $0x240] sm:$0xff]  }
 0x16e   :  { %7362 = vmatpush3.bf16.msra.mxu0 %v8122_v60  ;;  %v9206_v16 = vsel %vm1124_vm1, %v599_v59, %v927_v7  ;;  %v947_v60 = vrot.slane %v9003_v49, %v8912_v19  ;;  %v607_v62 = vrot.slane %v8928_v34, %v8916_v25  ;;  %v935_v10 = vrot.slane %v9003_v49, %v8916_v25 }
 0x16f   :  { %7363 = vmatprep.subr.bf16.mxu0 %v8124_v57  ;;  %v9209_v52 = vsel %vm1124_vm1, %v611_v8, %v939_v40  ;;  %v8130_v57 = vld [vmem:[#allocation5 + $0x138] sm:$0xff]   ;;  %v615_v58 = vrot.slane %v8928_v34, %v8918_v26  ;;  %v943_v21 = vrot.slane %v9003_v49, %v8918_v26  ;;  %v627_v22 = vrot.slane %v8928_v34, %v8920_v28 }
 0x170   :  { %7384 = vmatpush3.bf16.msra.mxu1 %v8123_v36  ;;  %v955_v27 = vrot.slane %v9003_v49, %v8920_v28  ;;  %v9228_v31 = vsel %vm1124_vm1, %v619_v61, %v947_v60  ;;  %v9231_v7 = vsel %vm1124_vm1, %v607_v62, %v935_v10  ;;  %v635_v36 = vrot.slane %v8928_v34, %v8922_v32  ;;  %v8133_v61 = vld [vmem:[#allocation5 + $0x2c0] sm:$0xff]  }
 0x171   :  { %7385 = vmatprep.subr.bf16.mxu1 %v8125_v37  ;;  %v963_v37 = vrot.slane %v9003_v49, %v8922_v32  ;;  %v9238_v59 = vsel %vm1124_vm1, %v615_v58, %v943_v21  ;;  %v1193_v8 = vpack.c.bf16 %v9022_v54, %v9022_v54  ;;  %v8134_v62 = vld [vmem:[#allocation5 + $0x200] sm:$0xff]   ;;  %v951_v10 = vrot.slane %v9003_v49, %v8933_v41  ;;  %v8136_v21 = vld [vmem:[#allocation5 + $0x248] sm:$0xff]  }
 0x172   :  { %7364 = vmatpush3.bf16.msra.mxu0 %v8126_v1  ;;  %9588 = vst [vmem:[#allocation16_spill] sm:$0xff] %v9238_v59  ;;  %v9241_v40 = vsel %vm1124_vm1, %v627_v22, %v955_v27  ;;  %v8131_v1 = vld [vmem:[#allocation5 + $0x1b8] sm:$0xff]   ;;  %v631_v58 = vrot.slane %v8928_v34, %v8941_v46  ;;  %v8135_v54 = vld [vmem:[#allocation5 + $0x280] sm:$0xff]   ;;  %v643_v22 = vrot.slane %v8931_v35, %v8903_v14 }
 0x173   :  { %7365 = vmatprep.subr.bf16.mxu0 %v8128_v50  ;;  %9589 = vst [vmem:[#allocation17_spill] sm:$0xff] %v9241_v40  ;;  %v9246_v60 = vsel %vm1124_vm1, %v635_v36, %v963_v37  ;;  %v623_v50 = vrot.slane %v8928_v34, %v8933_v41  ;;  %v651_v27 = vrot.slane %v8931_v35, %v8912_v19  ;;  %v8137_v34 = vld [vmem:[#allocation5 + $0x2c8] sm:$0xff]  }
 0x174   :  { %7386 = vmatpush3.bf16.msra.mxu1 %v8127_v53  ;;  %9590 = vst [vmem:[#allocation18_spill] sm:$0xff] %v9246_v60  ;;  %v959_v53 = vrot.slane %v9003_v49, %v8941_v46  ;;  %v979_v36 = vrot.slane %v9006_v4, %v8912_v19  ;;  %v967_v60 = vrot.slane %v9006_v4, %v8916_v25  ;;  %v8138_v40 = vld [vmem:[#allocation5 + $0x208] sm:$0xff]  }
 0x175   :  { %7387 = vmatprep.subr.bf16.mxu1 %v8129_v17  ;;  %v971_v17 = vrot.slane %v9006_v4, %v8903_v14  ;;  %v9265_v37 = vsel %vm1124_vm1, %v623_v50, %v951_v10  ;;  %v1198_v59 = vpack.c.bf16 %v9044_v39, %v9044_v39  ;;  %v1195_v10 = vpack.c.bf16 %v9038_v3, %v9038_v3 }
 0x176   :  { %7366 = vmatpush3.bf16.msra.mxu0 %v8130_v57  ;;  %v9268_v49 = vsel %vm1124_vm1, %v631_v58, %v959_v53  ;;  %v639_v57 = vrot.slane %v8931_v35, %v8916_v25  ;;  %v9280_v50 = vsel %vm1124_vm1, %v651_v27, %v979_v36  ;;  %v1200_v39 = vpack.c.bf16 %v9052_v45, %v9052_v45  ;;  %v8144_v36 = vld [vmem:[#allocation5 + $0x258] sm:$0xff]  }
 0x177   :  { %7395 = vmatprep.subr.bf16.mxu0 %v8132_v29  ;;  %v9277_v29 = vsel %vm1124_vm1, %v643_v22, %v971_v17  ;;  %v975_v53 = vrot.slane %v9006_v4, %v8918_v26  ;;  %v659_v3 = vrot.slane %v8931_v35, %v8920_v28  ;;  %v8142_v22 = vld [vmem:[#allocation5 + $0x210] sm:$0xff]   ;;  %v983_v27 = vrot.slane %v9006_v4, %v8933_v41 }
 0x178   :  { %7388 = vmatpush3.bf16.msra.mxu1 %v8131_v1  ;;  %v9285_v58 = vsel %vm1124_vm1, %v639_v57, %v967_v60  ;;  %v647_v1 = vrot.slane %v8931_v35, %v8918_v26  ;;  %v8141_v60 = vld [vmem:[#allocation5 + $0x2d0] sm:$0xff]  }
 0x179   :  { %5469 = vmatmul.mubr.bf16.vlgmr.msra.gmra.mrb[4].mxu0 %v1193_v8  ;;  %7417 = vmatprep.subr.bf16.mxu1 %v8133_v61  ;;  %v8140_v8 = vld [vmem:[#allocation5 + $0x250] sm:$0xff]   ;;  %v987_v61 = vrot.slane %v9006_v4, %v8920_v28 }
 0x17a   :  { %7396 = vmatpush3.bf16.msra.mxu0 %v8134_v62  ;;  %5548 = vmatprep.mubr.bf16.mxu0 %v1198_v59  ;;  %v8139_v59 = vld [vmem:[#allocation5 + $0x288] sm:$0xff]   ;;  %v9298_v45 = vsel %vm1124_vm1, %v647_v1, %v975_v53  ;;  %v667_v62 = vrot.slane %v8931_v35, %v8922_v32  ;;  %v675_v1 = vrot.slane %v8936_v42, %v8903_v14  ;;  %v8143_v53 = vld [vmem:[#allocation5 + $0x290] sm:$0xff]  }
 0x17b   :  { %5509 = vmatmul.mubr.bf16.vlgmr.msra.gmra.mrb[20].mxu1 %v1195_v10  ;;  %7397 = vmatprep.subr.bf16.mxu0 %v8136_v21  ;;  %v995_v21 = vrot.slane %v9006_v4, %v8922_v32  ;;  %v9305_v17 = vsel %vm1124_vm1, %v659_v3, %v987_v61  ;;  %v663_v10 = vrot.slane %v8931_v35, %v8941_v46  ;;  %v8145_v3 = vld [vmem:[#allocation5 + $0x2d8] sm:$0xff]  }
 0x17c   :  { %7418 = vmatpush3.bf16.msra.mxu1 %v8135_v54  ;;  %5588 = vmatprep.mubr.bf16.mxu1 %v1200_v39  ;;  %v655_v54 = vrot.slane %v8931_v35, %v8933_v41  ;;  %v683_v35 = vrot.slane %v8936_v42, %v8912_v19 }
 0x17d   :  { %7419 = vmatprep.subr.bf16.mxu1 %v8137_v34  ;;  %v9312_v57 = vsel %vm1124_vm1, %v667_v62, %v995_v21  ;;  %v991_v34 = vrot.slane %v9006_v4, %v8941_v46  ;;  %v1011_v4 = vrot.slane %v9013_v23, %v8912_v19  ;;  %v671_v21 = vrot.slane %v8936_v42, %v8916_v25 }
 0x17e   :  { %7398 = vmatpush3.bf16.msra.mxu0 %v8138_v40  ;;  %v9319_v39 = vsel %vm1124_vm1, %v655_v54, %v983_v27  ;;  %v1003_v40 = vrot.slane %v9013_v23, %v8903_v14  ;;  %v8148_v54 = vld [vmem:[#allocation5 + $0x260] sm:$0xff]  }
 0x17f   :  { %7399 = vmatprep.subr.bf16.mxu0 %v8140_v8  ;;  %v9326_v61 = vsel %vm1124_vm1, %v663_v10, %v991_v34  ;;  %v8146_v8 = vld [vmem:[#allocation5 + $0x218] sm:$0xff]   ;;  %v9340_v27 = vsel %vm1124_vm1, %v683_v35, %v1011_v4  ;;  %v679_v10 = vrot.slane %v8936_v42, %v8918_v26  ;;  %v8149_v35 = vld [vmem:[#allocation5 + $0x2e0] sm:$0xff]  }
 0x180   :  { %7420 = vmatpush3.bf16.msra.mxu1 %v8139_v59  ;;  %v9333_v62 = vsel %vm1124_vm1, %v675_v1, %v1003_v40  ;;  %v999_v59 = vrot.slane %v9013_v23, %v8916_v25  ;;  %9591 = vst [vmem:[#allocation19_spill] sm:$0xff] %v9340_v27  ;;  %v691_v1 = vrot.slane %v8936_v42, %v8920_v28  ;;  %v8147_v40 = vld [vmem:[#allocation5 + $0x298] sm:$0xff]  }
 0x181   :  { %7421 = vmatprep.subr.bf16.mxu1 %v8141_v60  ;;  %v1007_v60 = vrot.slane %v9013_v23, %v8918_v26  ;;  %v699_v27 = vrot.slane %v8936_v42, %v8922_v32 }
 0x182   :  { %7400 = vmatpush3.bf16.msra.mxu0 %v8142_v22  ;;  %v9347_v34 = vsel %vm1124_vm1, %v671_v21, %v999_v59  ;;  %v1019_v22 = vrot.slane %v9013_v23, %v8920_v28  ;;  %v8150_v21 = vld [vmem:[#allocation5 + $0x220] sm:$0xff]  }
 0x183   :  { %7401 = vmatprep.subr.bf16.mxu0 %v8144_v36  ;;  %9592 = vst [vmem:[#allocation20_spill] sm:$0xff] %v9347_v34  ;;  %v9354_v4 = vsel %vm1124_vm1, %v679_v10, %v1007_v60  ;;  %v1027_v36 = vrot.slane %v9013_v23, %v8922_v32  ;;  %v687_v34 = vrot.slane %v8936_v42, %v8933_v41  ;;  %v8152_v10 = vld [vmem:[#allocation5 + $0x268] sm:$0xff]  }
 0x184   :  { %7422 = vmatpush3.bf16.msra.mxu1 %v8143_v53  ;;  %9593 = vst [vmem:[#allocation21_spill] sm:$0xff] %v9354_v4  ;;  %v9361_v59 = vsel %vm1124_vm1, %v691_v1, %v1019_v22  ;;  %v1015_v53 = vrot.slane %v9013_v23, %v8933_v41  ;;  %v695_v4 = vrot.slane %v8936_v42, %v8941_v46 }
 0x185   :  { %7423 = vmatprep.subr.bf16.mxu1 %v8145_v3  ;;  %9594 = vst [vmem:[#allocation22_spill] sm:$0xff] %v9361_v59  ;;  %v9368_v60 = vsel %vm1124_vm1, %v699_v27, %v1027_v36  ;;  %v1023_v3 = vrot.slane %v9013_v23, %v8941_v46  ;;  %v707_v22 = vrot.slane %v8939_v43, %v8903_v14  ;;  %v8151_v59 = vld [vmem:[#allocation5 + $0x2a0] sm:$0xff]   ;;  %v8153_v27 = vld [vmem:[#allocation5 + $0x2e8] sm:$0xff]  }
 0x186   :  { %7402 = vmatpush3.bf16.msra.mxu0 %v8146_v8  ;;  %v9375_v1 = vsel %vm1124_vm1, %v687_v34, %v1015_v53  ;;  %v1035_v8 = vrot.slane %v9016_v24, %v8903_v14  ;;  %v715_v42 = vrot.slane %v8939_v43, %v8912_v19  ;;  %v1043_v23 = vrot.slane %v9016_v24, %v8912_v19 }
 0x187   :  { %7403 = vmatprep.subr.bf16.mxu0 %v8148_v54  ;;  %v9382_v36 = vsel %vm1124_vm1, %v695_v4, %v1023_v3  ;;  %v8154_v54 = vld [vmem:[#allocation5 + $0x228] sm:$0xff]   ;;  %v703_v14 = vrot.slane %v8939_v43, %v8916_v25  ;;  %v8156_v4 = vld [vmem:[#allocation5 + $0x270] sm:$0xff]   ;;  %v711_v3 = vrot.slane %v8939_v43, %v8918_v26  ;;  %v1039_v19 = vrot.slane %v9016_v24, %v8918_v26 }
 0x188   :  { %7424 = vmatpush3.bf16.msra.mxu1 %v8147_v40  ;;  %v9389_v34 = vsel %vm1124_vm1, %v707_v22, %v1035_v8  ;;  %v1031_v40 = vrot.slane %v9016_v24, %v8916_v25  ;;  %v9396_v53 = vsel %vm1124_vm1, %v715_v42, %v1043_v23  ;;  %v723_v22 = vrot.slane %v8939_v43, %v8920_v28  ;;  %v8157_v8 = vld [vmem:[#allocation5 + $0x2f0] sm:$0xff]  }
 0x189   :  { %7425 = vmatprep.subr.bf16.mxu1 %v8149_v35  ;;  %v1051_v25 = vrot.slane %v9016_v24, %v8920_v28  ;;  %v9410_v42 = vsel %vm1124_vm1, %v711_v3, %v1039_v19  ;;  %v731_v23 = vrot.slane %v8939_v43, %v8922_v32  ;;  %v1059_v26 = vrot.slane %v9016_v24, %v8922_v32 }
 0x18a   :  { %7404 = vmatpush3.bf16.msra.mxu0 %v8150_v21  ;;  %v9403_v35 = vsel %vm1124_vm1, %v703_v14, %v1031_v40  ;;  %v8155_v21 = vld [vmem:[#allocation5 + $0x2a8] sm:$0xff]   ;;  %v719_v28 = vrot.slane %v8939_v43, %v8933_v41  ;;  %v8160_v40 = vld [vmem:[#allocation5 + $0x278] sm:$0xff]   ;;  %v727_v19 = vrot.slane %v8939_v43, %v8941_v46  ;;  %v1055_v32 = vrot.slane %v9016_v24, %v8941_v46  ;;  %v8166_v46 = vld [vmem:[#allocation5 + $0x300] sm:$0xff]  }
 0x18b   :  { %7405 = vmatprep.subr.bf16.mxu0 %v8152_v10  ;;  %v8158_v10 = vld [vmem:[#allocation5 + $0x230] sm:$0xff]   ;;  %v9417_v14 = vsel %vm1124_vm1, %v723_v22, %v1051_v25  ;;  %v9424_v3 = vsel %vm1124_vm1, %v731_v23, %v1059_v26  ;;  %v8161_v25 = vld [vmem:[#allocation5 + $0x2f8] sm:$0xff]   ;;  %v8164_v23 = vld [vmem:[#allocation5 + $0x340] sm:$0xff]  }
 0x18c   :  { %7426 = vmatpush3.bf16.msra.mxu1 %v8151_v59  ;;  %v1047_v59 = vrot.slane %v9016_v24, %v8933_v41  ;;  %v8159_v22 = vld [vmem:[#allocation5 + $0x2b0] sm:$0xff]   ;;  %v9434_v41 = vsel %vm1124_vm1, %v727_v19, %v1055_v32  ;;  %v8163_v43 = vld [vmem:[#allocation5 + $0x2b8] sm:$0xff]   ;;  %v8165_v26 = vld [vmem:[#allocation5 + $0x3c0] sm:$0xff]  }
 0x18d   :  { %7427 = vmatprep.subr.bf16.mxu1 %v8153_v27  ;;  %v8167_v24 = vld [vmem:[#allocation5 + $0x380] sm:$0xff]   ;;  %v8171_v19 = vld [vmem:[#allocation5 + $0x388] sm:$0xff]   ;;  %v8173_v32 = vld [vmem:[#allocation5 + $0x3d0] sm:$0xff]  }
 0x18e   :  { %7406 = vmatpush3.bf16.msra.mxu0 %v8154_v54  ;;  %v9431_v27 = vsel %vm1124_vm1, %v719_v28, %v1047_v59  ;;  %v8162_v54 = vld [vmem:[#allocation5 + $0x238] sm:$0xff]   ;;  %v8169_v28 = vld [vmem:[#allocation5 + $0x3c8] sm:$0xff]   ;;  %v1199_v59 = vpack.c.bf16 %v9068_v48, %v9068_v48  ;;  %v8175_v48 = vld [vmem:[#allocation5 + $0x390] sm:$0xff]  }
 0x18f   :  { %7407 = vmatprep.subr.bf16.mxu0 %v8156_v4  ;;  %v8168_v4 = vld [vmem:[#allocation5 + $0x348] sm:$0xff]  }
 0x190   :  { %7428 = vmatpush3.bf16.msra.mxu1 %v8155_v21  ;;  %v1197_v21 = vpack.c.bf16 %v9058_v33, %v9058_v33  ;;  %v8172_v33 = vld [vmem:[#allocation5 + $0x350] sm:$0xff]  }
 0x191   :  { %7429 = vmatprep.subr.bf16.mxu1 %v8157_v8  ;;  %v1202_v8 = vpack.c.bf16 %v9085_v11, %v9085_v11  ;;  %v8174_v11 = vld [vmem:[#allocation5 + $0x310] sm:$0xff]  }
 0x192   :  { %7408 = vmatpush3.bf16.msra.mxu0 %v8158_v10  ;;  %v8170_v10 = vld [vmem:[#allocation5 + $0x308] sm:$0xff]  }
 0x193   :  { %7409 = vmatprep.subr.bf16.mxu0 %v8160_v40  ;;  %v1204_v40 = vpack.c.bf16 %v9094_v9, %v9094_v9  ;;  %v8179_v9 = vld [vmem:[#allocation5 + $0x398] sm:$0xff]  }
 0x194   :  { %7430 = vmatpush3.bf16.msra.mxu1 %v8159_v22  ;;  %v8176_v22 = vld [vmem:[#allocation5 + $0x358] sm:$0xff]  }
 0x195   :  { %7431 = vmatprep.subr.bf16.mxu1 %v8161_v25  ;;  %v8177_v25 = vld [vmem:[#allocation5 + $0x3d8] sm:$0xff]  }
 0x196   :  { %7410 = vmatpush3.bf16.msra.mxu0 %v8162_v54  ;;  %v8178_v54 = vld [vmem:[#allocation5 + $0x318] sm:$0xff]  }
 0x197   :  { %7439 = vmatprep.subr.bf16.mxu0 %v8164_v23  ;;  %v8180_v23 = vld [vmem:[#allocation5 + $0x360] sm:$0xff]  }
 0x198   :  { %7432 = vmatpush3.bf16.msra.mxu1 %v8163_v43  ;;  %v8181_v43 = vld [vmem:[#allocation5 + $0x3e0] sm:$0xff]  }
 0x199   :  { %5549 = vmatmul.mubr.bf16.vlgmr.msra.gmra.mrb[8].mxu0 %v1197_v21  ;;  %7461 = vmatprep.subr.bf16.mxu1 %v8165_v26  ;;  %v8182_v26 = vld [vmem:[#allocation5 + $0x320] sm:$0xff]   ;;  %v8186_v21 = vld [vmem:[#allocation5 + $0x328] sm:$0xff]  }
 0x19a   :  { %7440 = vmatpush3.bf16.msra.mxu0 %v8166_v46  ;;  %5628 = vmatprep.mubr.bf16.mxu0 %v1202_v8  ;;  %v8184_v46 = vld [vmem:[#allocation5 + $0x368] sm:$0xff]   ;;  %v8188_v8 = vld [vmem:[#allocation5 + $0x370] sm:$0xff]  }
 0x19b   :  { %5589 = vmatmul.mubr.bf16.vlgmr.msra.gmra.mrb[24].mxu1 %v1199_v59  ;;  %7441 = vmatprep.subr.bf16.mxu0 %v8168_v4  ;;  %v8185_v4 = vld [vmem:[#allocation5 + $0x3e8] sm:$0xff]   ;;  %v8190_v59 = vld [vmem:[#allocation5 + $0x330] sm:$0xff]  }
 0x19c   :  { %7462 = vmatpush3.bf16.msra.mxu1 %v8167_v24  ;;  %5668 = vmatprep.mubr.bf16.mxu1 %v1204_v40  ;;  %v8183_v24 = vld [vmem:[#allocation5 + $0x3a0] sm:$0xff]   ;;  %v8191_v40 = vld [vmem:[#allocation5 + $0x3b0] sm:$0xff]  }
 0x19d   :  { %7463 = vmatprep.subr.bf16.mxu1 %v8169_v28  ;;  %v8187_v28 = vld [vmem:[#allocation5 + $0x3a8] sm:$0xff]  }
 0x19e   :  { %7442 = vmatpush3.bf16.msra.mxu0 %v8170_v10  ;;  %v8189_v10 = vld [vmem:[#allocation5 + $0x3f0] sm:$0xff]  }
 0x19f   :  { %7443 = vmatprep.subr.bf16.mxu0 %v8172_v33  ;;  %v8192_v33 = vld [vmem:[#allocation5 + $0x378] sm:$0xff]  }
 0x1a0   :  { %7464 = vmatpush3.bf16.msra.mxu1 %v8171_v19  ;;  %v8193_v19 = vld [vmem:[#allocation5 + $0x3f8] sm:$0xff]  }
 0x1a1   :  { %7465 = vmatprep.subr.bf16.mxu1 %v8173_v32  ;;  %v8194_v32 = vld [vmem:[#allocation5 + $0x338] sm:$0xff]  }
 0x1a2   :  { %7444 = vmatpush3.bf16.msra.mxu0 %v8174_v11  ;;  %v8196_v11 = vld [vmem:[#allocation5 + $0x440] sm:$0xff]  }
 0x1a3   :  { %7445 = vmatprep.subr.bf16.mxu0 %v8176_v22  ;;  %v8195_v22 = vld [vmem:[#allocation5 + $0x3b8] sm:$0xff]  }
 0x1a4   :  { %7466 = vmatpush3.bf16.msra.mxu1 %v8175_v48  ;;  %v8197_v48 = vld [vmem:[#allocation5 + $0x4c0] sm:$0xff]  }
 0x1a5   :  { %7467 = vmatprep.subr.bf16.mxu1 %v8177_v25  ;;  %v8198_v25 = vld [vmem:[#allocation5 + $0x400] sm:$0xff]  }
 0x1a6   :  { %7446 = vmatpush3.bf16.msra.mxu0 %v8178_v54  ;;  %v8199_v54 = vld [vmem:[#allocation5 + $0x480] sm:$0xff]  }
 0x1a7   :  { %7447 = vmatprep.subr.bf16.mxu0 %v8180_v23  ;;  %v8200_v23 = vld [vmem:[#allocation5 + $0x448] sm:$0xff]  }
 0x1a8   :  { %7468 = vmatpush3.bf16.msra.mxu1 %v8179_v9  ;;  %v1201_v9 = vpack.c.bf16 %v9097_v5, %v9097_v5  ;;  %v8204_v5 = vld [vmem:[#allocation5 + $0x450] sm:$0xff]  }
 0x1a9   :  { %7469 = vmatprep.subr.bf16.mxu1 %v8181_v43  ;;  %v8201_v43 = vld [vmem:[#allocation5 + $0x4c8] sm:$0xff]  }
 0x1aa   :  { %7448 = vmatpush3.bf16.msra.mxu0 %v8182_v26  ;;  %v1206_v26 = vpack.c.bf16 %v9105_v12, %v9105_v12  ;;  %v8206_v12 = vld [vmem:[#allocation5 + $0x410] sm:$0xff]  }
 0x1ab   :  { %7449 = vmatprep.subr.bf16.mxu0 %v8184_v46  ;;  %v8202_v46 = vld [vmem:[#allocation5 + $0x408] sm:$0xff]  }
 0x1ac   :  { %7470 = vmatpush3.bf16.msra.mxu1 %v8183_v24  ;;  %v1203_v24 = vpack.c.bf16 %v9100_v6, %v9100_v6  ;;  %v8207_v6 = vld [vmem:[#allocation5 + $0x490] sm:$0xff]  }
 0x1ad   :  { %7471 = vmatprep.subr.bf16.mxu1 %v8185_v4  ;;  %v1208_v4 = vpack.c.bf16 %v9114_v30, %v9114_v30  ;;  %v8211_v30 = vld [vmem:[#allocation5 + $0x498] sm:$0xff]  }
 0x1ae   :  { %7450 = vmatpush3.bf16.msra.mxu0 %v8186_v21  ;;  %v8203_v21 = vld [vmem:[#allocation5 + $0x488] sm:$0xff]  }
 0x1af   :  { %7451 = vmatprep.subr.bf16.mxu0 %v8188_v8  ;;  %v8208_v8 = vld [vmem:[#allocation5 + $0x458] sm:$0xff]  }
 0x1b0   :  { %7472 = vmatpush3.bf16.msra.mxu1 %v8187_v28  ;;  %v8205_v28 = vld [vmem:[#allocation5 + $0x4d0] sm:$0xff]  }
 0x1b1   :  { %7473 = vmatprep.subr.bf16.mxu1 %v8189_v10  ;;  %v8209_v10 = vld [vmem:[#allocation5 + $0x4d8] sm:$0xff]  }
 0x1b2   :  { %7452 = vmatpush3.bf16.msra.mxu0 %v8190_v59  ;;  %v8210_v59 = vld [vmem:[#allocation5 + $0x418] sm:$0xff]  }
 0x1b3   :  { %7453 = vmatprep.subr.bf16.mxu0 %v8192_v33  ;;  %v8213_v33 = vld [vmem:[#allocation5 + $0x4e0] sm:$0xff]  }
 0x1b4   :  { %7474 = vmatpush3.bf16.msra.mxu1 %v8191_v40  ;;  %v8212_v40 = vld [vmem:[#allocation5 + $0x460] sm:$0xff]  }
 0x1b5   :  { %7475 = vmatprep.subr.bf16.mxu1 %v8193_v19  ;;  %v8214_v19 = vld [vmem:[#allocation5 + $0x420] sm:$0xff]  }
 0x1b6   :  { %7454 = vmatpush3.bf16.msra.mxu0 %v8194_v32  ;;  %v8216_v32 = vld [vmem:[#allocation5 + $0x468] sm:$0xff]  }
 0x1b7   :  { %7483 = vmatprep.subr.bf16.mxu0 %v8196_v11  ;;  %v8215_v11 = vld [vmem:[#allocation5 + $0x4a0] sm:$0xff]  }
 0x1b8   :  { %7476 = vmatpush3.bf16.msra.mxu1 %v8195_v22  ;;  %v8217_v22 = vld [vmem:[#allocation5 + $0x4e8] sm:$0xff]  }
 0x1b9   :  { %5629 = vmatmul.mubr.bf16.vlgmr.msra.gmra.mrb[12].mxu0 %v1201_v9  ;;  %7505 = vmatprep.subr.bf16.mxu1 %v8197_v48  ;;  %v8218_v48 = vld [vmem:[#allocation5 + $0x428] sm:$0xff]   ;;  %v8222_v9 = vld [vmem:[#allocation5 + $0x430] sm:$0xff]  }
 0x1ba   :  { %7484 = vmatpush3.bf16.msra.mxu0 %v8198_v25  ;;  %5708 = vmatprep.mubr.bf16.mxu0 %v1206_v26  ;;  %v8219_v25 = vld [vmem:[#allocation5 + $0x4a8] sm:$0xff]   ;;  %v8223_v26 = vld [vmem:[#allocation5 + $0x4b0] sm:$0xff]  }
 0x1bb   :  { %5669 = vmatmul.mubr.bf16.vlgmr.msra.gmra.mrb[28].mxu1 %v1203_v24  ;;  %7485 = vmatprep.subr.bf16.mxu0 %v8200_v23  ;;  %v8221_v23 = vld [vmem:[#allocation5 + $0x4f0] sm:$0xff]   ;;  %v8226_v24 = vld [vmem:[#allocation5 + $0x438] sm:$0xff]  }
 0x1bc   :  { %7506 = vmatpush3.bf16.msra.mxu1 %v8199_v54  ;;  %5748 = vmatprep.mubr.bf16.mxu1 %v1208_v4  ;;  %v8220_v54 = vld [vmem:[#allocation5 + $0x470] sm:$0xff]   ;;  %v8228_v4 = vld [vmem:[#allocation5 + $0x540] sm:$0xff]  }
 0x1bd   :  { %7507 = vmatprep.subr.bf16.mxu1 %v8201_v43  ;;  %v8224_v43 = vld [vmem:[#allocation5 + $0x478] sm:$0xff]  }
 0x1be   :  { %7486 = vmatpush3.bf16.msra.mxu0 %v8202_v46  ;;  %v8225_v46 = vld [vmem:[#allocation5 + $0x4f8] sm:$0xff]  }
 0x1bf   :  { %7487 = vmatprep.subr.bf16.mxu0 %v8204_v5  ;;  %v8227_v5 = vld [vmem:[#allocation5 + $0x4b8] sm:$0xff]  }
 0x1c0   :  { %7508 = vmatpush3.bf16.msra.mxu1 %v8203_v21  ;;  %v8229_v21 = vld [vmem:[#allocation5 + $0x5c0] sm:$0xff]  }
 0x1c1   :  { %7509 = vmatprep.subr.bf16.mxu1 %v8205_v28  ;;  %v8230_v28 = vld [vmem:[#allocation5 + $0x500] sm:$0xff]  }
 0x1c2   :  { %7488 = vmatpush3.bf16.msra.mxu0 %v8206_v12  ;;  %v8231_v12 = vld [vmem:[#allocation5 + $0x580] sm:$0xff]  }
 0x1c3   :  { %7489 = vmatprep.subr.bf16.mxu0 %v8208_v8  ;;  %v8232_v8 = vld [vmem:[#allocation5 + $0x548] sm:$0xff]  }
 0x1c4   :  { %7510 = vmatpush3.bf16.msra.mxu1 %v8207_v6  ;;  %v1205_v6 = vpack.c.bf16 %v9117_v63, %v9117_v63  ;;  %v8236_v63 = vld [vmem:[#allocation5 + $0x550] sm:$0xff]  }
 0x1c5   :  { %7511 = vmatprep.subr.bf16.mxu1 %v8209_v10  ;;  %v8233_v10 = vld [vmem:[#allocation5 + $0x5c8] sm:$0xff]  }
 0x1c6   :  { %7490 = vmatpush3.bf16.msra.mxu0 %v8210_v59  ;;  %v1210_v59 = vpack.c.bf16 %v9141_v15, %v9141_v15  ;;  %v8238_v15 = vld [vmem:[#allocation5 + $0x510] sm:$0xff]  }
 0x1c7   :  { %7491 = vmatprep.subr.bf16.mxu0 %v8212_v40  ;;  %v8234_v40 = vld [vmem:[#allocation5 + $0x508] sm:$0xff]  }
 0x1c8   :  { %7512 = vmatpush3.bf16.msra.mxu1 %v8211_v30  ;;  %v1207_v30 = vpack.c.bf16 %v9132_v44, %v9132_v44  ;;  %v8239_v44 = vld [vmem:[#allocation5 + $0x590] sm:$0xff]  }
 0x1c9   :  { %7513 = vmatprep.subr.bf16.mxu1 %v8213_v33  ;;  %v1212_v33 = vpack.c.bf16 %v9144_v13, %v9144_v13  ;;  %v8243_v13 = vld [vmem:[#allocation5 + $0x598] sm:$0xff]  }
 0x1ca   :  { %7492 = vmatpush3.bf16.msra.mxu0 %v8214_v19  ;;  %v8235_v19 = vld [vmem:[#allocation5 + $0x588] sm:$0xff]  }
 0x1cb   :  { %7493 = vmatprep.subr.bf16.mxu0 %v8216_v32  ;;  %v8237_v32 = vld [vmem:[#allocation5 + $0x5d0] sm:$0xff]  }
 0x1cc   :  { %7514 = vmatpush3.bf16.msra.mxu1 %v8215_v11  ;;  %v8240_v11 = vld [vmem:[#allocation5 + $0x558] sm:$0xff]  }
 0x1cd   :  { %7515 = vmatprep.subr.bf16.mxu1 %v8217_v22  ;;  %v8241_v22 = vld [vmem:[#allocation5 + $0x5d8] sm:$0xff]  }
 0x1ce   :  { %7494 = vmatpush3.bf16.msra.mxu0 %v8218_v48  ;;  %v8242_v48 = vld [vmem:[#allocation5 + $0x518] sm:$0xff]  }
 0x1cf   :  { %7495 = vmatprep.subr.bf16.mxu0 %v8220_v54  ;;  %v8245_v54 = vld [vmem:[#allocation5 + $0x5e0] sm:$0xff]  }
 0x1d0   :  { %7516 = vmatpush3.bf16.msra.mxu1 %v8219_v25  ;;  %v8244_v25 = vld [vmem:[#allocation5 + $0x560] sm:$0xff]  }
 0x1d1   :  { %7517 = vmatprep.subr.bf16.mxu1 %v8221_v23  ;;  %v8246_v23 = vld [vmem:[#allocation5 + $0x520] sm:$0xff]  }
 0x1d2   :  { %7496 = vmatpush3.bf16.msra.mxu0 %v8222_v9  ;;  %v8248_v9 = vld [vmem:[#allocation5 + $0x568] sm:$0xff]  }
 0x1d3   :  { %7497 = vmatprep.subr.bf16.mxu0 %v8224_v43  ;;  %v8247_v43 = vld [vmem:[#allocation5 + $0x5a0] sm:$0xff]  }
 0x1d4   :  { %7518 = vmatpush3.bf16.msra.mxu1 %v8223_v26  ;;  %v8249_v26 = vld [vmem:[#allocation5 + $0x5e8] sm:$0xff]  }
 0x1d5   :  { %7519 = vmatprep.subr.bf16.mxu1 %v8225_v46  ;;  %v8250_v46 = vld [vmem:[#allocation5 + $0x528] sm:$0xff]  }
 0x1d6   :  { %7498 = vmatpush3.bf16.msra.mxu0 %v8226_v24  ;;  %v8251_v24 = vld [vmem:[#allocation5 + $0x5a8] sm:$0xff]  }
 0x1d7   :  { %7527 = vmatprep.subr.bf16.mxu0 %v8228_v4  ;;  %v8252_v4 = vld [vmem:[#allocation5 + $0x570] sm:$0xff]  }
 0x1d8   :  { %7520 = vmatpush3.bf16.msra.mxu1 %v8227_v5  ;;  %v8253_v5 = vld [vmem:[#allocation5 + $0x5f0] sm:$0xff]  }
 0x1d9   :  { %5709 = vmatmul.mubr.bf16.vlgmr.msra.gmra.mrb[16].mxu0 %v1205_v6  ;;  %7549 = vmatprep.subr.bf16.mxu1 %v8229_v21  ;;  %v8254_v21 = vld [vmem:[#allocation5 + $0x530] sm:$0xff]   ;;  %v8258_v6 = vld [vmem:[#allocation5 + $0x538] sm:$0xff]  }
 0x1da   :  { %7528 = vmatpush3.bf16.msra.mxu0 %v8230_v28  ;;  %5788 = vmatprep.mubr.bf16.mxu0 %v1210_v59  ;;  %v8256_v28 = vld [vmem:[#allocation5 + $0x578] sm:$0xff]  }
 0x1db   :  { %5749 = vmatmul.mubr.bf16.vlgmr.msra.gmra.mrb[32].mxu1 %v1207_v30  ;;  %7529 = vmatprep.subr.bf16.mxu0 %v8232_v8  ;;  %v8257_v8 = vld [vmem:[#allocation5 + $0x5f8] sm:$0xff]   ;;  %v8262_v30 = vld [vmem:[#allocation5 + $0x600] sm:$0xff]  }
 0x1dc   :  { %7550 = vmatpush3.bf16.msra.mxu1 %v8231_v12  ;;  %5828 = vmatprep.mubr.bf16.mxu1 %v1212_v33  ;;  %v8255_v12 = vld [vmem:[#allocation5 + $0x5b0] sm:$0xff]   ;;  %v8259_v59 = vld [vmem:[#allocation5 + $0x5b8] sm:$0xff]   ;;  %v8263_v33 = vld [vmem:[#allocation5 + $0x680] sm:$0xff]  }
 0x1dd   :  { %7551 = vmatprep.subr.bf16.mxu1 %v8233_v10  ;;  %v8260_v10 = vld [vmem:[#allocation5 + $0x640] sm:$0xff]  }
 0x1de   :  { %7530 = vmatpush3.bf16.msra.mxu0 %v8234_v40  ;;  %v8261_v40 = vld [vmem:[#allocation5 + $0x6c0] sm:$0xff]  }
 0x1df   :  { %7531 = vmatprep.subr.bf16.mxu0 %v8236_v63  ;;  %v8264_v63 = vld [vmem:[#allocation5 + $0x648] sm:$0xff]  }
 0x1e0   :  { %7552 = vmatpush3.bf16.msra.mxu1 %v8235_v19  ;;  %v1209_v19 = vpack.c.bf16 %v9151_v18, %v9151_v18  ;;  %v8268_v18 = vld [vmem:[#allocation5 + $0x650] sm:$0xff]  }
 0x1e1   :  { %7553 = vmatprep.subr.bf16.mxu1 %v8237_v32  ;;  %v8265_v32 = vld [vmem:[#allocation5 + $0x6c8] sm:$0xff]  }
 0x1e2   :  { %7532 = vmatpush3.bf16.msra.mxu0 %v8238_v15  ;;  %v1214_v15 = vpack.c.bf16 %v9159_v47, %v9159_v47  ;;  %v8270_v47 = vld [vmem:[#allocation5 + $0x610] sm:$0xff]  }
 0x1e3   :  { %7533 = vmatprep.subr.bf16.mxu0 %v8240_v11  ;;  %v8266_v11 = vld [vmem:[#allocation5 + $0x608] sm:$0xff]  }
 0x1e4   :  { %7554 = vmatpush3.bf16.msra.mxu1 %v8239_v44  ;;  %v1211_v44 = vpack.c.bf16 %v9154_v56, %v9154_v56  ;;  %v8271_v56 = vld [vmem:[#allocation5 + $0x690] sm:$0xff]  }
 0x1e5   :  { %7555 = vmatprep.subr.bf16.mxu1 %v8241_v22  ;;  %v1216_v22 = vpack.c.bf16 %v9162_v55, %v9162_v55  ;;  %v8275_v55 = vld [vmem:[#allocation5 + $0x698] sm:$0xff]  }
 0x1e6   :  { %7534 = vmatpush3.bf16.msra.mxu0 %v8242_v48  ;;  %v8267_v48 = vld [vmem:[#allocation5 + $0x688] sm:$0xff]  }
 0x1e7   :  { %7535 = vmatprep.subr.bf16.mxu0 %v8244_v25  ;;  %v8269_v25 = vld [vmem:[#allocation5 + $0x6d0] sm:$0xff]  }
 0x1e8   :  { %7556 = vmatpush3.bf16.msra.mxu1 %v8243_v13  ;;  %v8272_v13 = vld [vmem:[#allocation5 + $0x658] sm:$0xff]  }
 0x1e9   :  { %7557 = vmatprep.subr.bf16.mxu1 %v8245_v54  ;;  %v8273_v54 = vld [vmem:[#allocation5 + $0x6d8] sm:$0xff]  }
 0x1ea   :  { %7536 = vmatpush3.bf16.msra.mxu0 %v8246_v23  ;;  %v8274_v23 = vld [vmem:[#allocation5 + $0x618] sm:$0xff]  }
 0x1eb   :  { %7537 = vmatprep.subr.bf16.mxu0 %v8248_v9  ;;  %v8276_v9 = vld [vmem:[#allocation5 + $0x660] sm:$0xff]  }
 0x1ec   :  { %7558 = vmatpush3.bf16.msra.mxu1 %v8247_v43  ;;  %v8277_v43 = vld [vmem:[#allocation5 + $0x6e0] sm:$0xff]  }
 0x1ed   :  { %7559 = vmatprep.subr.bf16.mxu1 %v8249_v26  ;;  %v8278_v26 = vld [vmem:[#allocation5 + $0x620] sm:$0xff]  }
 0x1ee   :  { %7538 = vmatpush3.bf16.msra.mxu0 %v8250_v46  ;;  %v8280_v46 = vld [vmem:[#allocation5 + $0x668] sm:$0xff]  }
 0x1ef   :  { %7539 = vmatprep.subr.bf16.mxu0 %v8252_v4  ;;  %v8281_v4 = vld [vmem:[#allocation5 + $0x6e8] sm:$0xff]  }
 0x1f0   :  { %7560 = vmatpush3.bf16.msra.mxu1 %v8251_v24  ;;  %v8279_v24 = vld [vmem:[#allocation5 + $0x6a0] sm:$0xff]  }
 0x1f1   :  { %7561 = vmatprep.subr.bf16.mxu1 %v8253_v5  ;;  %v8282_v5 = vld [vmem:[#allocation5 + $0x628] sm:$0xff]  }
 0x1f2   :  { %7540 = vmatpush3.bf16.msra.mxu0 %v8254_v21  ;;  %v8283_v21 = vld [vmem:[#allocation5 + $0x6a8] sm:$0xff]  }
 0x1f3   :  { %7541 = vmatprep.subr.bf16.mxu0 %v8256_v28  ;;  %v8284_v28 = vld [vmem:[#allocation5 + $0x670] sm:$0xff]  }
 0x1f4   :  { %7562 = vmatpush3.bf16.msra.mxu1 %v8255_v12  ;;  %v8285_v12 = vld [vmem:[#allocation5 + $0x6f0] sm:$0xff]  }
 0x1f5   :  { %7563 = vmatprep.subr.bf16.mxu1 %v8257_v8  ;;  %v8286_v8 = vld [vmem:[#allocation5 + $0x630] sm:$0xff]  }
 0x1f6   :  { %7542 = vmatpush3.bf16.msra.mxu0 %v8258_v6  ;;  %v8288_v6 = vld [vmem:[#allocation5 + $0x678] sm:$0xff]  }
 0x1f7   :  { %7571 = vmatprep.subr.bf16.mxu0 %v8260_v10  ;;  %v8287_v10 = vld [vmem:[#allocation5 + $0x6b0] sm:$0xff]  }
 0x1f8   :  { %7564 = vmatpush3.bf16.msra.mxu1 %v8259_v59  ;;  %v8289_v59 = vld [vmem:[#allocation5 + $0x6f8] sm:$0xff]  }
 0x1f9   :  { %5789 = vmatmul.mubr.bf16.vlgmr.msra.gmra.mrb[20].mxu0 %v1209_v19  ;;  %7593 = vmatprep.subr.bf16.mxu1 %v8261_v40  ;;  %v8290_v40 = vld [vmem:[#allocation5 + $0x638] sm:$0xff]   ;;  %v8294_v19 = vld [vmem:[#allocation5 + $0x700] sm:$0xff]  }
 0x1fa   :  { %7572 = vmatpush3.bf16.msra.mxu0 %v8262_v30  ;;  %5868 = vmatprep.mubr.bf16.mxu0 %v1214_v15  ;;  %v8292_v30 = vld [vmem:[#allocation5 + $0x740] sm:$0xff]   ;;  %v8296_v15 = vld [vmem:[#allocation5 + $0x748] sm:$0xff]  }
 0x1fb   :  { %5829 = vmatmul.mubr.bf16.vlgmr.msra.gmra.mrb[36].mxu1 %v1211_v44  ;;  %7573 = vmatprep.subr.bf16.mxu0 %v8264_v63  ;;  %v8293_v63 = vld [vmem:[#allocation5 + $0x7c0] sm:$0xff]   ;;  %v8297_v44 = vld [vmem:[#allocation5 + $0x7c8] sm:$0xff]  }
 0x1fc   :  { %7594 = vmatpush3.bf16.msra.mxu1 %v8263_v33  ;;  %5908 = vmatprep.mubr.bf16.mxu1 %v1216_v22  ;;  %v8291_v33 = vld [vmem:[#allocation5 + $0x6b8] sm:$0xff]   ;;  %v1218_v22 = vpack.c.bf16 %v9195_v2, %v9195_v2  ;;  %v8302_v2 = vld [vmem:[#allocation5 + $0x710] sm:$0xff]  }
 0x1fd   :  { %7595 = vmatprep.subr.bf16.mxu1 %v8265_v32  ;;  %v8295_v32 = vld [vmem:[#allocation5 + $0x780] sm:$0xff]  }
 0x1fe   :  { %7574 = vmatpush3.bf16.msra.mxu0 %v8266_v11  ;;  %v1213_v11 = vpack.c.bf16 %v9185_v38, %v9185_v38  ;;  %v8300_v38 = vld [vmem:[#allocation5 + $0x750] sm:$0xff]  }
 0x1ff   :  { %7575 = vmatprep.subr.bf16.mxu0 %v8268_v18  ;;  %v8298_v18 = vld [vmem:[#allocation5 + $0x708] sm:$0xff]  }
 0x200   :  { %7596 = vmatpush3.bf16.msra.mxu1 %v8267_v48  ;;  %v1215_v48 = vpack.c.bf16 %v9188_v0, %v9188_v0  ;;  %v8303_v0 = vld [vmem:[#allocation5 + $0x790] sm:$0xff]  }
 0x201   :  { %7597 = vmatprep.subr.bf16.mxu1 %v8269_v25  ;;  %v1220_v25 = vpack.c.bf16 %v9198_v20, %v9198_v20  ;;  %v8307_v20 = vld [vmem:[#allocation5 + $0x798] sm:$0xff]  }
 0x202   :  { %7576 = vmatpush3.bf16.msra.mxu0 %v8270_v47  ;;  %v8299_v47 = vld [vmem:[#allocation5 + $0x788] sm:$0xff]  }
 0x203   :  { %7577 = vmatprep.subr.bf16.mxu0 %v8272_v13  ;;  %v8301_v13 = vld [vmem:[#allocation5 + $0x7d0] sm:$0xff]  }
 0x204   :  { %7598 = vmatpush3.bf16.msra.mxu1 %v8271_v56  ;;  %v8304_v56 = vld [vmem:[#allocation5 + $0x758] sm:$0xff]  }
 0x205   :  { %7599 = vmatprep.subr.bf16.mxu1 %v8273_v54  ;;  %v8305_v54 = vld [vmem:[#allocation5 + $0x7d8] sm:$0xff]  }
 0x206   :  { %7578 = vmatpush3.bf16.msra.mxu0 %v8274_v23  ;;  %v8306_v23 = vld [vmem:[#allocation5 + $0x718] sm:$0xff]  }
 0x207   :  { %7579 = vmatprep.subr.bf16.mxu0 %v8276_v9  ;;  %v8308_v9 = vld [vmem:[#allocation5 + $0x760] sm:$0xff]  }
 0x208   :  { %7600 = vmatpush3.bf16.msra.mxu1 %v8275_v55  ;;  %v8309_v55 = vld [vmem:[#allocation5 + $0x7e0] sm:$0xff]  }
 0x209   :  { %7601 = vmatprep.subr.bf16.mxu1 %v8277_v43  ;;  %v8310_v43 = vld [vmem:[#allocation5 + $0x720] sm:$0xff]  }
 0x20a   :  { %7580 = vmatpush3.bf16.msra.mxu0 %v8278_v26  ;;  %v8312_v26 = vld [vmem:[#allocation5 + $0x768] sm:$0xff]  }
 0x20b   :  { %7581 = vmatprep.subr.bf16.mxu0 %v8280_v46  ;;  %v8311_v46 = vld [vmem:[#allocation5 + $0x7a0] sm:$0xff]  }
 0x20c   :  { %7602 = vmatpush3.bf16.msra.mxu1 %v8279_v24  ;;  %v8313_v24 = vld [vmem:[#allocation5 + $0x7e8] sm:$0xff]  }
 0x20d   :  { %7603 = vmatprep.subr.bf16.mxu1 %v8281_v4  ;;  %v8314_v4 = vld [vmem:[#allocation5 + $0x728] sm:$0xff]  }
 0x20e   :  { %7582 = vmatpush3.bf16.msra.mxu0 %v8282_v5  ;;  %v8315_v5 = vld [vmem:[#allocation5 + $0x7a8] sm:$0xff]  }
 0x20f   :  { %7583 = vmatprep.subr.bf16.mxu0 %v8284_v28  ;;  %v6785_v28 = vld [vmem:[#allocation7] ss:$0 sm:$0xff] }
 0x210   :  { %7604 = vmatpush3.bf16.msra.mxu1 %v8283_v21  ;;  %v8316_v21 = vld [vmem:[#allocation5 + $0x770] sm:$0xff]  }
 0x211   :  { %7605 = vmatprep.subr.bf16.mxu1 %v8285_v12  ;;  %v8317_v12 = vld [vmem:[#allocation5 + $0x7f0] sm:$0xff]  }
 0x212   :  { %7584 = vmatpush3.bf16.msra.mxu0 %v8286_v8 }
 0x213   :  { %7585 = vmatprep.subr.bf16.mxu0 %v8288_v6  ;;  %v8318_v6 = vld [vmem:[#allocation5 + $0x730] sm:$0xff]  }
 0x214   :  { %7606 = vmatpush3.bf16.msra.mxu1 %v8287_v10 }
 0x215   :  { %7607 = vmatprep.subr.bf16.mxu1 %v8289_v59  ;;  %v8320_v59 = vld [vmem:[#allocation5 + $0x778] sm:$0xff]  }
 0x216   :  { %7586 = vmatpush3.bf16.msra.mxu0 %v8290_v40 }
 0x217   :  { %7615 = vmatprep.subr.bf16.mxu0 %v8292_v30 }
 0x218   :  { %7608 = vmatpush3.bf16.msra.mxu1 %v8291_v33 }
 0x219   :  { %5869 = vmatmul.mubr.bf16.vlgmr.msra.gmra.mrb[24].mxu0 %v1213_v11  ;;  %7637 = vmatprep.subr.bf16.mxu1 %v8293_v63 }
 0x21a   :  { %7616 = vmatpush3.bf16.msra.mxu0 %v8294_v19  ;;  %5948 = vmatprep.mubr.bf16.mxu0 %v1218_v22 }
 0x21b   :  { %5909 = vmatmul.mubr.bf16.vlgmr.msra.gmra.mrb[40].mxu1 %v1215_v48  ;;  %7617 = vmatprep.subr.bf16.mxu0 %v8296_v15 }
 0x21c   :  { %7638 = vmatpush3.bf16.msra.mxu1 %v8295_v32  ;;  %5988 = vmatprep.mubr.bf16.mxu1 %v1220_v25  ;;  %v8322_v25 = vld [vmem:[#allocation5 + $0x738] sm:$0xff]  }
 0x21d   :  { %7639 = vmatprep.subr.bf16.mxu1 %v8297_v44  ;;  %v8319_v44 = vld [vmem:[#allocation5 + $0x7b0] sm:$0xff]  }
 0x21e   :  { %7618 = vmatpush3.bf16.msra.mxu0 %v8298_v18  ;;  %v8321_v18 = vld [vmem:[#allocation5 + $0x7f8] sm:$0xff]  }
 0x21f   :  { %7619 = vmatprep.subr.bf16.mxu0 %v8300_v38  ;;  %v8324_v38 = vld [vmem:[#allocation5 + $0x840] sm:$0xff]  }
 0x220   :  { %7640 = vmatpush3.bf16.msra.mxu1 %v8299_v47  ;;  %v8323_v47 = vld [vmem:[#allocation5 + $0x7b8] sm:$0xff]  }
 0x221   :  { %7641 = vmatprep.subr.bf16.mxu1 %v8301_v13  ;;  %v8325_v13 = vld [vmem:[#allocation5 + $0x8c0] sm:$0xff]  }
 0x222   :  { %7620 = vmatpush3.bf16.msra.mxu0 %v8302_v2  ;;  %v8326_v2 = vld [vmem:[#allocation5 + $0x800] sm:$0xff]  }
 0x223   :  { %7621 = vmatprep.subr.bf16.mxu0 %v8304_v56  ;;  %v8327_v56 = vld [vmem:[#allocation5 + $0x880] sm:$0xff]  }
 0x224   :  { %7642 = vmatpush3.bf16.msra.mxu1 %v8303_v0  ;;  %v8328_v0 = vld [vmem:[#allocation5 + $0x848] sm:$0xff]  }
 0x225   :  { %7643 = vmatprep.subr.bf16.mxu1 %v8305_v54  ;;  %v1217_v54 = vpack.c.bf16 %v9203_v51, %v9203_v51  ;;  %v8332_v51 = vld [vmem:[#allocation5 + $0x850] sm:$0xff]  }
 0x226   :  { %7622 = vmatpush3.bf16.msra.mxu0 %v8306_v23  ;;  %v8329_v23 = vld [vmem:[#allocation5 + $0x8c8] sm:$0xff]  }
 0x227   :  { %7623 = vmatprep.subr.bf16.mxu0 %v8308_v9  ;;  %v1222_v9 = vpack.c.bf16 %v9209_v52, %v9209_v52  ;;  %v8334_v52 = vld [vmem:[#allocation5 + $0x810] sm:$0xff]  }
 0x228   :  { %7644 = vmatpush3.bf16.msra.mxu1 %v8307_v20  ;;  %v8330_v20 = vld [vmem:[#allocation5 + $0x808] sm:$0xff]  }
 0x229   :  { %7645 = vmatprep.subr.bf16.mxu1 %v8309_v55  ;;  %v1219_v55 = vpack.c.bf16 %v9206_v16, %v9206_v16  ;;  %v8335_v16 = vld [vmem:[#allocation5 + $0x890] sm:$0xff]  }
 0x22a   :  { %7624 = vmatpush3.bf16.msra.mxu0 %v8310_v43  ;;  %v1224_v43 = vpack.c.bf16 %v9228_v31, %v9228_v31  ;;  %v8339_v31 = vld [vmem:[#allocation5 + $0x898] sm:$0xff]  }
 0x22b   :  { %7625 = vmatprep.subr.bf16.mxu0 %v8312_v26  ;;  %v8331_v26 = vld [vmem:[#allocation5 + $0x888] sm:$0xff]  }
 0x22c   :  { %7646 = vmatpush3.bf16.msra.mxu1 %v8311_v46  ;;  %v7323_v8 = vpop.f32.mrb[0].mxu0  ;;  %v8333_v46 = vld [vmem:[#allocation5 + $0x8d0] sm:$0xff]  }
 0x22d   :  { %7647 = vmatprep.subr.bf16.mxu1 %v8313_v24  ;;  %v7324_v10 = vpop.f32.mrb[1].mxu0  ;;  %v8336_v24 = vld [vmem:[#allocation5 + $0x858] sm:$0xff]  }
 0x22e   :  { %v7345_v40 = vpop.f32.mrb[16].mxu1  ;;  %v7325_v30 = vadd.f32 %v7324_v10, %v7323_v8  ;;  %7626 = vmatpush3.bf16.msra.mxu0 %v8314_v4  ;;  %v7326_v33 = vpop.f32.mrb[2].mxu0  ;;  %v8337_v4 = vld [vmem:[#allocation5 + $0x8d8] sm:$0xff]   ;;  %v8344_v8 = vld [vmem:[#allocation5 + $0x868] sm:$0xff]  }
 0x22f   :  { %v7346_v63 = vpop.f32.mrb[17].mxu1  ;;  %v7327_v19 = vpop.f32.mrb[3].mxu0  ;;  %7627 = vmatprep.subr.bf16.mxu0 %v8316_v21  ;;  %v8340_v21 = vld [vmem:[#allocation5 + $0x860] sm:$0xff]   ;;  %v8345_v10 = vld [vmem:[#allocation5 + $0x8e8] sm:$0xff]  }
 0x230   :  { %v5391_v32 = vadd.f32 %v7325_v30, %v6785_v28  ;;  %v7347_v15 = vadd.f32 %v7346_v63, %v7345_v40  ;;  %7648 = vmatpush3.bf16.msra.mxu1 %v8315_v5  ;;  %v7348_v11 = vpop.f32.mrb[18].mxu1  ;;  %v8338_v5 = vld [vmem:[#allocation5 + $0x818] sm:$0xff]   ;;  %v8341_v28 = vld [vmem:[#allocation5 + $0x8e0] sm:$0xff]   ;;  %v8348_v40 = vld [vmem:[#allocation5 + $0x870] sm:$0xff]  }
 0x231   :  { %v7349_v22 = vpop.f32.mrb[19].mxu1  ;;  %7649 = vmatprep.subr.bf16.mxu1 %v8317_v12  ;;  %v8342_v12 = vld [vmem:[#allocation5 + $0x820] sm:$0xff]   ;;  %v8347_v33 = vld [vmem:[#allocation5 + $0x8a8] sm:$0xff]   ;;  %v8349_v19 = vld [vmem:[#allocation5 + $0x8f0] sm:$0xff]  }
 0x232   :  { %v9476_v48 = vadd.f32 %v7347_v15, %v5391_v32  ;;  %7628 = vmatpush3.bf16.msra.mxu0 %v8318_v6  ;;  %v8343_v6 = vld [vmem:[#allocation5 + $0x8a0] sm:$0xff]  }
 0x233   :  { %7629 = vmatprep.subr.bf16.mxu0 %v8320_v59  ;;  %v8346_v59 = vld [vmem:[#allocation5 + $0x828] sm:$0xff]  }
 0x234   :  { %7650 = vmatpush3.bf16.msra.mxu1 %v8319_v44  ;;  %v8350_v44 = vld [vmem:[#allocation5 + $0x830] sm:$0xff]  }
 0x235   :  { %7651 = vmatprep.subr.bf16.mxu1 %v8321_v18 }
 0x236   :  { %7630 = vmatpush3.bf16.msra.mxu0 %v8322_v25  ;;  %v8352_v25 = vld [vmem:[#allocation5 + $0x878] sm:$0xff]  }
 0x237   :  { %7659 = vmatprep.subr.bf16.mxu0 %v8324_v38 }
 0x238   :  { %7652 = vmatpush3.bf16.msra.mxu1 %v8323_v47 }
 0x239   :  { %5949 = vmatmul.mubr.bf16.vlgmr.msra.gmra.mrb[28].mxu0 %v1217_v54  ;;  %7681 = vmatprep.subr.bf16.mxu1 %v8325_v13 }
 0x23a   :  { %7660 = vmatpush3.bf16.msra.mxu0 %v8326_v2  ;;  %6028 = vmatprep.mubr.bf16.mxu0 %v1222_v9  ;;  %v8351_v2 = vld [vmem:[#allocation5 + $0x8b0] sm:$0xff]   ;;  %v8356_v9 = vld [vmem:[#allocation5 + $0x940] sm:$0xff]  }
 0x23b   :  { %5989 = vmatmul.mubr.bf16.vlgmr.msra.gmra.mrb[44].mxu1 %v1219_v55  ;;  %7661 = vmatprep.subr.bf16.mxu0 %v8328_v0  ;;  %v8353_v0 = vld [vmem:[#allocation5 + $0x8f8] sm:$0xff]   ;;  %v8357_v55 = vld [vmem:[#allocation5 + $0x9c0] sm:$0xff]  }
 0x23c   :  { %7682 = vmatpush3.bf16.msra.mxu1 %v8327_v56  ;;  %6068 = vmatprep.mubr.bf16.mxu1 %v1224_v43  ;;  %v8358_v43 = vld [vmem:[#allocation5 + $0x900] sm:$0xff]  }
 0x23d   :  { %7683 = vmatprep.subr.bf16.mxu1 %v8329_v23  ;;  %v8354_v23 = vld [vmem:[#allocation5 + $0x838] sm:$0xff]  }
 0x23e   :  { %7662 = vmatpush3.bf16.msra.mxu0 %v8330_v20  ;;  %v8355_v20 = vld [vmem:[#allocation5 + $0x8b8] sm:$0xff]  }
 0x23f   :  { %7663 = vmatprep.subr.bf16.mxu0 %v8332_v51  ;;  %v8360_v51 = vld [vmem:[#allocation5 + $0x948] sm:$0xff]  }
 0x240   :  { %7684 = vmatpush3.bf16.msra.mxu1 %v8331_v26  ;;  %v9595_v26 = vld [vmem:[#allocation17_spill] sm:$0xff] }
 0x241   :  { %7685 = vmatprep.subr.bf16.mxu1 %v8333_v46  ;;  %v1226_v46 = vpack.c.bf16 %v9595_v26, %v9595_v26 }
 0x242   :  { %7664 = vmatpush3.bf16.msra.mxu0 %v8334_v52  ;;  %v8359_v52 = vld [vmem:[#allocation5 + $0x980] sm:$0xff]  }
 0x243   :  { %7665 = vmatprep.subr.bf16.mxu0 %v8336_v24  ;;  %v9596_v24 = vld [vmem:[#allocation16_spill] sm:$0xff] }
 0x244   :  { %7686 = vmatpush3.bf16.msra.mxu1 %v8335_v16  ;;  %v1223_v16 = vpack.c.bf16 %v9596_v24, %v9596_v24  ;;  %v8386_v24 = vld [vmem:[#allocation5 + $0x938] sm:$0xff]  }
 0x245   :  { %7687 = vmatprep.subr.bf16.mxu1 %v8337_v4  ;;  %v8361_v4 = vld [vmem:[#allocation5 + $0x9c8] sm:$0xff]  }
 0x246   :  { %7666 = vmatpush3.bf16.msra.mxu0 %v8338_v5  ;;  %v9597_v5 = vld [vmem:[#allocation18_spill] sm:$0xff] }
 0x247   :  { %7667 = vmatprep.subr.bf16.mxu0 %v8340_v21  ;;  %v1228_v21 = vpack.c.bf16 %v9597_v5, %v9597_v5  ;;  %v8389_v5 = vld [vmem:[#allocation5 + $0xac0] sm:$0xff]  }
 0x248   :  { %7688 = vmatpush3.bf16.msra.mxu1 %v8339_v31  ;;  %v8362_v31 = vld [vmem:[#allocation5 + $0x908] sm:$0xff]  }
 0x249   :  { %7689 = vmatprep.subr.bf16.mxu1 %v8341_v28  ;;  %v8363_v28 = vld [vmem:[#allocation5 + $0x988] sm:$0xff]  }
 0x24a   :  { %7668 = vmatpush3.bf16.msra.mxu0 %v8342_v12  ;;  %v8365_v12 = vld [vmem:[#allocation5 + $0x9d0] sm:$0xff]  }
 0x24b   :  { %7669 = vmatprep.subr.bf16.mxu0 %v8344_v8  ;;  %v8366_v8 = vld [vmem:[#allocation5 + $0x910] sm:$0xff]  }
 0x24c   :  { %7690 = vmatpush3.bf16.msra.mxu1 %v8343_v6  ;;  %v7367_v30 = vpop.f32.mrb[4].mxu0  ;;  %v8368_v6 = vld [vmem:[#allocation5 + $0x958] sm:$0xff]  }
 0x24d   :  { %v7368_v63 = vpop.f32.mrb[5].mxu0  ;;  %7691 = vmatprep.subr.bf16.mxu1 %v8345_v10  ;;  %v8367_v10 = vld [vmem:[#allocation5 + $0x990] sm:$0xff]  }
 0x24e   :  { %v7389_v32 = vpop.f32.mrb[20].mxu1  ;;  %v7369_v15 = vadd.f32 %v7368_v63, %v7367_v30  ;;  %v7370_v11 = vpop.f32.mrb[6].mxu0  ;;  %7670 = vmatpush3.bf16.msra.mxu0 %v8346_v59  ;;  %v8369_v59 = vld [vmem:[#allocation5 + $0x9d8] sm:$0xff]   ;;  %v8372_v30 = vld [vmem:[#allocation5 + $0x960] sm:$0xff]  }
 0x24f   :  { %v7390_v22 = vpop.f32.mrb[21].mxu1  ;;  %v7371_v18 = vpop.f32.mrb[7].mxu0  ;;  %7671 = vmatprep.subr.bf16.mxu0 %v8348_v40  ;;  %v8370_v40 = vld [vmem:[#allocation5 + $0x918] sm:$0xff]   ;;  %v8373_v63 = vld [vmem:[#allocation5 + $0x9e0] sm:$0xff]   ;;  %v8377_v11 = vld [vmem:[#allocation5 + $0x9e8] sm:$0xff]  }
 0x250   :  { %v5471_v38 = vadd.f32 %v7369_v15, %v9476_v48  ;;  %v7391_v47 = vadd.f32 %v7390_v22, %v7389_v32  ;;  %v7392_v13 = vpop.f32.mrb[22].mxu1  ;;  %7692 = vmatpush3.bf16.msra.mxu1 %v8347_v33  ;;  %v1221_v48 = vpack.c.bf16 %v9231_v7, %v9231_v7  ;;  %v8364_v7 = vld [vmem:[#allocation5 + $0x950] sm:$0xff]   ;;  %v8371_v33 = vld [vmem:[#allocation5 + $0x998] sm:$0xff]   ;;  %v8376_v32 = vld [vmem:[#allocation5 + $0x968] sm:$0xff]  }
 0x251   :  { %v7393_v56 = vpop.f32.mrb[23].mxu1  ;;  %7693 = vmatprep.subr.bf16.mxu1 %v8349_v19  ;;  %v8374_v19 = vld [vmem:[#allocation5 + $0x920] sm:$0xff]   ;;  %v8380_v22 = vld [vmem:[#allocation5 + $0x970] sm:$0xff]  }
 0x252   :  { %v9487_v54 = vadd.f32 %v7391_v47, %v5471_v38  ;;  %7672 = vmatpush3.bf16.msra.mxu0 %v8350_v44  ;;  %v8375_v15 = vld [vmem:[#allocation5 + $0x9a0] sm:$0xff]   ;;  %v8378_v44 = vld [vmem:[#allocation5 + $0x928] sm:$0xff]   ;;  %v8381_v47 = vld [vmem:[#allocation5 + $0x9f0] sm:$0xff]  }
 0x253   :  { %7673 = vmatprep.subr.bf16.mxu0 %v8352_v25  ;;  %v8379_v25 = vld [vmem:[#allocation5 + $0x9a8] sm:$0xff]  }
 0x254   :  { %7694 = vmatpush3.bf16.msra.mxu1 %v8351_v2 }
 0x255   :  { %7695 = vmatprep.subr.bf16.mxu1 %v8353_v0  ;;  %v8382_v0 = vld [vmem:[#allocation5 + $0x930] sm:$0xff]  }
 0x256   :  { %7674 = vmatpush3.bf16.msra.mxu0 %v8354_v23 }
 0x257   :  { %7703 = vmatprep.subr.bf16.mxu0 %v8356_v9 }
 0x258   :  { %7696 = vmatpush3.bf16.msra.mxu1 %v8355_v20  ;;  %v8384_v20 = vld [vmem:[#allocation5 + $0x978] sm:$0xff]  }
 0x259   :  { %6029 = vmatmul.mubr.bf16.vlgmr.msra.gmra.mrb[32].mxu0 %v1221_v48  ;;  %7725 = vmatprep.subr.bf16.mxu1 %v8357_v55 }
 0x25a   :  { %7704 = vmatpush3.bf16.msra.mxu0 %v8358_v43  ;;  %6108 = vmatprep.mubr.bf16.mxu0 %v1226_v46  ;;  %v8385_v46 = vld [vmem:[#allocation5 + $0x9f8] sm:$0xff]  }
 0x25b   :  { %6069 = vmatmul.mubr.bf16.vlgmr.msra.gmra.mrb[48].mxu1 %v1223_v16  ;;  %7705 = vmatprep.subr.bf16.mxu0 %v8360_v51  ;;  %v8383_v51 = vld [vmem:[#allocation5 + $0x9b0] sm:$0xff]   ;;  %v8388_v16 = vld [vmem:[#allocation5 + $0xa40] sm:$0xff]  }
 0x25c   :  { %7726 = vmatpush3.bf16.msra.mxu1 %v8359_v52  ;;  %6148 = vmatprep.mubr.bf16.mxu1 %v1228_v21  ;;  %v8390_v21 = vld [vmem:[#allocation5 + $0xa00] sm:$0xff]  }
 0x25d   :  { %7727 = vmatprep.subr.bf16.mxu1 %v8361_v4  ;;  %v8387_v4 = vld [vmem:[#allocation5 + $0x9b8] sm:$0xff]  }
 0x25e   :  { %7706 = vmatpush3.bf16.msra.mxu0 %v8362_v31  ;;  %v8392_v31 = vld [vmem:[#allocation5 + $0xa48] sm:$0xff]  }
 0x25f   :  { %7707 = vmatprep.subr.bf16.mxu0 %v8364_v7  ;;  %v1230_v7 = vpack.c.bf16 %v9277_v29, %v9277_v29  ;;  %v8397_v29 = vld [vmem:[#allocation5 + $0xad0] sm:$0xff]  }
 0x260   :  { %7728 = vmatpush3.bf16.msra.mxu1 %v8363_v28  ;;  %v8391_v28 = vld [vmem:[#allocation5 + $0xa80] sm:$0xff]  }
 0x261   :  { %7729 = vmatprep.subr.bf16.mxu1 %v8365_v12  ;;  %v1227_v12 = vpack.c.bf16 %v9268_v49, %v9268_v49  ;;  %v8400_v49 = vld [vmem:[#allocation5 + $0xa58] sm:$0xff]  }
 0x262   :  { %7708 = vmatpush3.bf16.msra.mxu0 %v8366_v8  ;;  %v8393_v8 = vld [vmem:[#allocation5 + $0xac8] sm:$0xff]  }
 0x263   :  { %7709 = vmatprep.subr.bf16.mxu0 %v8368_v6  ;;  %v1232_v6 = vpack.c.bf16 %v9280_v50, %v9280_v50  ;;  %v8404_v50 = vld [vmem:[#allocation5 + $0xa60] sm:$0xff]  }
 0x264   :  { %7730 = vmatpush3.bf16.msra.mxu1 %v8367_v10  ;;  %v8394_v10 = vld [vmem:[#allocation5 + $0xa08] sm:$0xff]  }
 0x265   :  { %7731 = vmatprep.subr.bf16.mxu1 %v8369_v59  ;;  %v8395_v59 = vld [vmem:[#allocation5 + $0xa88] sm:$0xff]  }
 0x266   :  { %7710 = vmatpush3.bf16.msra.mxu0 %v8370_v40  ;;  %v8398_v40 = vld [vmem:[#allocation5 + $0xa10] sm:$0xff]  }
 0x267   :  { %7711 = vmatprep.subr.bf16.mxu0 %v8372_v30  ;;  %v8399_v30 = vld [vmem:[#allocation5 + $0xa90] sm:$0xff]  }
 0x268   :  { %7732 = vmatpush3.bf16.msra.mxu1 %v8371_v33  ;;  %v8401_v33 = vld [vmem:[#allocation5 + $0xad8] sm:$0xff]  }
 0x269   :  { %7733 = vmatprep.subr.bf16.mxu1 %v8373_v63  ;;  %v8402_v63 = vld [vmem:[#allocation5 + $0xa18] sm:$0xff]  }
 0x26a   :  { %7712 = vmatpush3.bf16.msra.mxu0 %v8374_v19  ;;  %v8403_v19 = vld [vmem:[#allocation5 + $0xa98] sm:$0xff]  }
 0x26b   :  { %7713 = vmatprep.subr.bf16.mxu0 %v8376_v32  ;;  %v8405_v32 = vld [vmem:[#allocation5 + $0xae0] sm:$0xff]  }
 0x26c   :  { %7734 = vmatpush3.bf16.msra.mxu1 %v8375_v15  ;;  %v7411_v18 = vpop.f32.mrb[8].mxu0  ;;  %v8406_v15 = vld [vmem:[#allocation5 + $0xa20] sm:$0xff]  }
 0x26d   :  { %v7412_v38 = vpop.f32.mrb[9].mxu0  ;;  %7735 = vmatprep.subr.bf16.mxu1 %v8377_v11  ;;  %v8408_v11 = vld [vmem:[#allocation5 + $0xa68] sm:$0xff]  }
 0x26e   :  { %v7433_v13 = vpop.f32.mrb[24].mxu1  ;;  %v7413_v2 = vadd.f32 %v7412_v38, %v7411_v18  ;;  %v7414_v56 = vpop.f32.mrb[10].mxu0  ;;  %7714 = vmatpush3.bf16.msra.mxu0 %v8378_v44  ;;  %v8407_v44 = vld [vmem:[#allocation5 + $0xaa0] sm:$0xff]   ;;  %v8410_v18 = vld [vmem:[#allocation5 + $0xa28] sm:$0xff]  }
 0x26f   :  { %v7434_v23 = vpop.f32.mrb[25].mxu1  ;;  %v7415_v9 = vpop.f32.mrb[11].mxu0  ;;  %7715 = vmatprep.subr.bf16.mxu0 %v8380_v22  ;;  %v8409_v22 = vld [vmem:[#allocation5 + $0xae8] sm:$0xff]  }
 0x270   :  { %v5551_v55 = vadd.f32 %v7413_v2, %v9487_v54  ;;  %v7435_v43 = vadd.f32 %v7434_v23, %v7433_v13  ;;  %v7436_v48 = vpop.f32.mrb[26].mxu1  ;;  %7736 = vmatpush3.bf16.msra.mxu1 %v8379_v25  ;;  %v1225_v54 = vpack.c.bf16 %v9265_v37, %v9265_v37  ;;  %v8396_v37 = vld [vmem:[#allocation5 + $0xa50] sm:$0xff]  }
 0x271   :  { %v7437_v26 = vpop.f32.mrb[27].mxu1  ;;  %7737 = vmatprep.subr.bf16.mxu1 %v8381_v47  ;;  %v8412_v25 = vld [vmem:[#allocation5 + $0xa70] sm:$0xff]   ;;  %v8411_v47 = vld [vmem:[#allocation5 + $0xaa8] sm:$0xff]  }
 0x272   :  { %v9498_v52 = vadd.f32 %v7435_v43, %v5551_v55  ;;  %7716 = vmatpush3.bf16.msra.mxu0 %v8382_v0  ;;  %v8413_v2 = vld [vmem:[#allocation5 + $0xaf0] sm:$0xff]   ;;  %v8416_v43 = vld [vmem:[#allocation5 + $0xa78] sm:$0xff]  }
 0x273   :  { %7717 = vmatprep.subr.bf16.mxu0 %v8384_v20  ;;  %v8414_v9 = vld [vmem:[#allocation5 + $0xa30] sm:$0xff]  }
 0x274   :  { %7738 = vmatpush3.bf16.msra.mxu1 %v8383_v51 }
 0x275   :  { %7739 = vmatprep.subr.bf16.mxu1 %v8385_v46  ;;  %v8415_v46 = vld [vmem:[#allocation5 + $0xab0] sm:$0xff]  }
 0x276   :  { %7718 = vmatpush3.bf16.msra.mxu0 %v8386_v24 }
 0x277   :  { %7747 = vmatprep.subr.bf16.mxu0 %v8388_v16  ;;  %v8417_v16 = vld [vmem:[#allocation5 + $0xaf8] sm:$0xff]  }
 0x278   :  { %7740 = vmatpush3.bf16.msra.mxu1 %v8387_v4 }
 0x279   :  { %6109 = vmatmul.mubr.bf16.vlgmr.msra.gmra.mrb[36].mxu0 %v1225_v54  ;;  %7769 = vmatprep.subr.bf16.mxu1 %v8389_v5  ;;  %v8418_v5 = vld [vmem:[#allocation5 + $0xa38] sm:$0xff]  }
 0x27a   :  { %7748 = vmatpush3.bf16.msra.mxu0 %v8390_v21  ;;  %6188 = vmatprep.mubr.bf16.mxu0 %v1230_v7  ;;  %v8420_v21 = vld [vmem:[#allocation5 + $0xb40] sm:$0xff]   ;;  %v8419_v54 = vld [vmem:[#allocation5 + $0xab8] sm:$0xff]  }
 0x27b   :  { %6149 = vmatmul.mubr.bf16.vlgmr.msra.gmra.mrb[52].mxu1 %v1227_v12  ;;  %7749 = vmatprep.subr.bf16.mxu0 %v8392_v31  ;;  %v8421_v31 = vld [vmem:[#allocation5 + $0xbc0] sm:$0xff]   ;;  %v1234_v12 = vpack.c.bf16 %v9305_v17, %v9305_v17  ;;  %v8429_v17 = vld [vmem:[#allocation5 + $0xbd0] sm:$0xff]  }
 0x27c   :  { %7770 = vmatpush3.bf16.msra.mxu1 %v8391_v28  ;;  %6228 = vmatprep.mubr.bf16.mxu1 %v1232_v6  ;;  %v8422_v7 = vld [vmem:[#allocation5 + $0xb00] sm:$0xff]   ;;  %v8424_v28 = vld [vmem:[#allocation5 + $0xb48] sm:$0xff]   ;;  %v1231_v6 = vpack.c.bf16 %v9298_v45, %v9298_v45  ;;  %v8432_v45 = vld [vmem:[#allocation5 + $0xb58] sm:$0xff]  }
 0x27d   :  { %7771 = vmatprep.subr.bf16.mxu1 %v8393_v8  ;;  %v8423_v8 = vld [vmem:[#allocation5 + $0xb80] sm:$0xff]  }
 0x27e   :  { %7750 = vmatpush3.bf16.msra.mxu0 %v8394_v10  ;;  %v8425_v10 = vld [vmem:[#allocation5 + $0xbc8] sm:$0xff]  }
 0x27f   :  { %7751 = vmatprep.subr.bf16.mxu0 %v8396_v37  ;;  %v1236_v37 = vpack.c.bf16 %v9312_v57, %v9312_v57  ;;  %v8436_v57 = vld [vmem:[#allocation5 + $0xb60] sm:$0xff]  }
 0x280   :  { %7772 = vmatpush3.bf16.msra.mxu1 %v8395_v59  ;;  %v8426_v59 = vld [vmem:[#allocation5 + $0xb08] sm:$0xff]  }
 0x281   :  { %7773 = vmatprep.subr.bf16.mxu1 %v8397_v29  ;;  %v8427_v29 = vld [vmem:[#allocation5 + $0xb88] sm:$0xff]  }
 0x282   :  { %7752 = vmatpush3.bf16.msra.mxu0 %v8398_v40  ;;  %v8430_v40 = vld [vmem:[#allocation5 + $0xb10] sm:$0xff]  }
 0x283   :  { %7753 = vmatprep.subr.bf16.mxu0 %v8400_v49  ;;  %v8431_v49 = vld [vmem:[#allocation5 + $0xb90] sm:$0xff]  }
 0x284   :  { %7774 = vmatpush3.bf16.msra.mxu1 %v8399_v30  ;;  %v8433_v30 = vld [vmem:[#allocation5 + $0xbd8] sm:$0xff]  }
 0x285   :  { %7775 = vmatprep.subr.bf16.mxu1 %v8401_v33  ;;  %v8434_v33 = vld [vmem:[#allocation5 + $0xb18] sm:$0xff]  }
 0x286   :  { %7754 = vmatpush3.bf16.msra.mxu0 %v8402_v63  ;;  %v8435_v63 = vld [vmem:[#allocation5 + $0xb98] sm:$0xff]  }
 0x287   :  { %7755 = vmatprep.subr.bf16.mxu0 %v8404_v50  ;;  %v8437_v50 = vld [vmem:[#allocation5 + $0xbe0] sm:$0xff]  }
 0x288   :  { %7776 = vmatpush3.bf16.msra.mxu1 %v8403_v19  ;;  %v8438_v19 = vld [vmem:[#allocation5 + $0xb20] sm:$0xff]  }
 0x289   :  { %7777 = vmatprep.subr.bf16.mxu1 %v8405_v32  ;;  %v8440_v32 = vld [vmem:[#allocation5 + $0xb68] sm:$0xff]  }
 0x28a   :  { %7756 = vmatpush3.bf16.msra.mxu0 %v8406_v15  ;;  %v8439_v15 = vld [vmem:[#allocation5 + $0xba0] sm:$0xff]  }
 0x28b   :  { %7757 = vmatprep.subr.bf16.mxu0 %v8408_v11  ;;  %v8441_v11 = vld [vmem:[#allocation5 + $0xbe8] sm:$0xff]  }
 0x28c   :  { %7778 = vmatpush3.bf16.msra.mxu1 %v8407_v44  ;;  %v7455_v38 = vpop.f32.mrb[12].mxu0  ;;  %v8442_v44 = vld [vmem:[#allocation5 + $0xb28] sm:$0xff]  }
 0x28d   :  { %v7456_v13 = vpop.f32.mrb[13].mxu0  ;;  %7779 = vmatprep.subr.bf16.mxu1 %v8409_v22  ;;  %v8444_v22 = vld [vmem:[#allocation5 + $0xb70] sm:$0xff]  }
 0x28e   :  { %v7477_v56 = vpop.f32.mrb[28].mxu1  ;;  %v7457_v0 = vadd.f32 %v7456_v13, %v7455_v38  ;;  %v7458_v23 = vpop.f32.mrb[14].mxu0  ;;  %7758 = vmatpush3.bf16.msra.mxu0 %v8410_v18 }
 0x28f   :  { %v7478_v20 = vpop.f32.mrb[29].mxu1  ;;  %v7459_v55 = vpop.f32.mrb[15].mxu0  ;;  %7759 = vmatprep.subr.bf16.mxu0 %v8412_v25  ;;  %v8443_v25 = vld [vmem:[#allocation5 + $0xba8] sm:$0xff]  }
 0x290   :  { %v5631_v48 = vadd.f32 %v7457_v0, %v9498_v52  ;;  %v7479_v51 = vadd.f32 %v7478_v20, %v7477_v56  ;;  %v7480_v26 = vpop.f32.mrb[30].mxu1  ;;  %7780 = vmatpush3.bf16.msra.mxu1 %v8411_v47  ;;  %v1229_v52 = vpack.c.bf16 %v9285_v58, %v9285_v58  ;;  %v8428_v58 = vld [vmem:[#allocation5 + $0xb50] sm:$0xff]   ;;  %v8448_v20 = vld [vmem:[#allocation5 + $0xb78] sm:$0xff]  }
 0x291   :  { %v7481_v24 = vpop.f32.mrb[31].mxu1  ;;  %7781 = vmatprep.subr.bf16.mxu1 %v8413_v2  ;;  %v8445_v47 = vld [vmem:[#allocation5 + $0xbf0] sm:$0xff]  }
 0x292   :  { %v9509_v4 = vadd.f32 %v7479_v51, %v5631_v48  ;;  %7760 = vmatpush3.bf16.msra.mxu0 %v8414_v9  ;;  %v8446_v0 = vld [vmem:[#allocation5 + $0xb30] sm:$0xff]  }
 0x293   :  { %7761 = vmatprep.subr.bf16.mxu0 %v8416_v43  ;;  %v8447_v51 = vld [vmem:[#allocation5 + $0xbb0] sm:$0xff]  }
 0x294   :  { %7782 = vmatpush3.bf16.msra.mxu1 %v8415_v46  ;;  %v8449_v46 = vld [vmem:[#allocation5 + $0xbf8] sm:$0xff]  }
 0x295   :  { %7783 = vmatprep.subr.bf16.mxu1 %v8417_v16  ;;  %v8450_v16 = vld [vmem:[#allocation5 + $0xb38] sm:$0xff]  }
 0x296   :  { %7762 = vmatpush3.bf16.msra.mxu0 %v8418_v5  ;;  %v8452_v5 = vld [vmem:[#allocation5 + $0xc40] sm:$0xff]  }
 0x297   :  { %7791 = vmatprep.subr.bf16.mxu0 %v8420_v21  ;;  %v8451_v21 = vld [vmem:[#allocation5 + $0xbb8] sm:$0xff]  }
 0x298   :  { %7784 = vmatpush3.bf16.msra.mxu1 %v8419_v54  ;;  %v8453_v54 = vld [vmem:[#allocation5 + $0xcc0] sm:$0xff]  }
 0x299   :  { %6189 = vmatmul.mubr.bf16.vlgmr.msra.gmra.mrb[40].mxu0 %v1229_v52  ;;  %7813 = vmatprep.subr.bf16.mxu1 %v8421_v31  ;;  %v8454_v31 = vld [vmem:[#allocation5 + $0xc00] sm:$0xff]   ;;  %v1238_v52 = vpack.c.bf16 %v9333_v62, %v9333_v62  ;;  %v8461_v62 = vld [vmem:[#allocation5 + $0xcd0] sm:$0xff]  }
 0x29a   :  { %7792 = vmatpush3.bf16.msra.mxu0 %v8422_v7  ;;  %6268 = vmatprep.mubr.bf16.mxu0 %v1234_v12  ;;  %v8456_v7 = vld [vmem:[#allocation5 + $0xc48] sm:$0xff]   ;;  %v1235_v12 = vpack.c.bf16 %v9326_v61, %v9326_v61  ;;  %v8464_v61 = vld [vmem:[#allocation5 + $0xc58] sm:$0xff]  }
 0x29b   :  { %6229 = vmatmul.mubr.bf16.vlgmr.msra.gmra.mrb[56].mxu1 %v1231_v6  ;;  %7793 = vmatprep.subr.bf16.mxu0 %v8424_v28  ;;  %v8455_v28 = vld [vmem:[#allocation5 + $0xc80] sm:$0xff]  }
 0x29c   :  { %7814 = vmatpush3.bf16.msra.mxu1 %v8423_v8  ;;  %6308 = vmatprep.mubr.bf16.mxu1 %v1236_v37  ;;  %v8457_v8 = vld [vmem:[#allocation5 + $0xcc8] sm:$0xff]   ;;  %v9598_v6 = vld [vmem:[#allocation19_spill] sm:$0xff] }
 0x29d   :  { %7815 = vmatprep.subr.bf16.mxu1 %v8425_v10  ;;  %v1240_v10 = vpack.c.bf16 %v9598_v6, %v9598_v6  ;;  %v8458_v37 = vld [vmem:[#allocation5 + $0xc08] sm:$0xff]  }
 0x29e   :  { %7794 = vmatpush3.bf16.msra.mxu0 %v8426_v59  ;;  %v8459_v59 = vld [vmem:[#allocation5 + $0xc88] sm:$0xff]  }
 0x29f   :  { %7795 = vmatprep.subr.bf16.mxu0 %v8428_v58  ;;  %v8462_v58 = vld [vmem:[#allocation5 + $0xc10] sm:$0xff]   ;;  %v8490_v6 = vld [vmem:[#allocation5 + $0xd08] sm:$0xff]  }
 0x2a0   :  { %7816 = vmatpush3.bf16.msra.mxu1 %v8427_v29  ;;  %v8463_v29 = vld [vmem:[#allocation5 + $0xc90] sm:$0xff]  }
 0x2a1   :  { %7817 = vmatprep.subr.bf16.mxu1 %v8429_v17  ;;  %v8465_v17 = vld [vmem:[#allocation5 + $0xcd8] sm:$0xff]  }
 0x2a2   :  { %7796 = vmatpush3.bf16.msra.mxu0 %v8430_v40  ;;  %v8466_v40 = vld [vmem:[#allocation5 + $0xc18] sm:$0xff]  }
 0x2a3   :  { %7797 = vmatprep.subr.bf16.mxu0 %v8432_v45  ;;  %v8468_v45 = vld [vmem:[#allocation5 + $0xc60] sm:$0xff]  }
 0x2a4   :  { %7818 = vmatpush3.bf16.msra.mxu1 %v8431_v49  ;;  %v8467_v49 = vld [vmem:[#allocation5 + $0xc98] sm:$0xff]  }
 0x2a5   :  { %7819 = vmatprep.subr.bf16.mxu1 %v8433_v30  ;;  %v8469_v30 = vld [vmem:[#allocation5 + $0xce0] sm:$0xff]  }
 0x2a6   :  { %7798 = vmatpush3.bf16.msra.mxu0 %v8434_v33  ;;  %v8470_v33 = vld [vmem:[#allocation5 + $0xc20] sm:$0xff]  }
 0x2a7   :  { %7799 = vmatprep.subr.bf16.mxu0 %v8436_v57  ;;  %v8472_v57 = vld [vmem:[#allocation5 + $0xc68] sm:$0xff]  }
 0x2a8   :  { %7820 = vmatpush3.bf16.msra.mxu1 %v8435_v63  ;;  %v8471_v63 = vld [vmem:[#allocation5 + $0xca0] sm:$0xff]  }
 0x2a9   :  { %7821 = vmatprep.subr.bf16.mxu1 %v8437_v50  ;;  %v8473_v50 = vld [vmem:[#allocation5 + $0xce8] sm:$0xff]  }
 0x2aa   :  { %7800 = vmatpush3.bf16.msra.mxu0 %v8438_v19  ;;  %v8474_v19 = vld [vmem:[#allocation5 + $0xc28] sm:$0xff]  }
 0x2ab   :  { %7801 = vmatprep.subr.bf16.mxu0 %v8440_v32  ;;  %v8476_v32 = vld [vmem:[#allocation5 + $0xc70] sm:$0xff]  }
 0x2ac   :  { %7822 = vmatpush3.bf16.msra.mxu1 %v8439_v15  ;;  %v7499_v18 = vpop.f32.mrb[16].mxu0 }
 0x2ad   :  { %v7500_v38 = vpop.f32.mrb[17].mxu0  ;;  %7823 = vmatprep.subr.bf16.mxu1 %v8441_v11  ;;  %v8475_v11 = vld [vmem:[#allocation5 + $0xca8] sm:$0xff]  }
 0x2ae   :  { %v7521_v13 = vpop.f32.mrb[32].mxu1  ;;  %v7501_v2 = vadd.f32 %v7500_v38, %v7499_v18  ;;  %v7502_v56 = vpop.f32.mrb[18].mxu0  ;;  %7802 = vmatpush3.bf16.msra.mxu0 %v8442_v44 }
 0x2af   :  { %v7522_v23 = vpop.f32.mrb[33].mxu1  ;;  %v7503_v9 = vpop.f32.mrb[19].mxu0  ;;  %7803 = vmatprep.subr.bf16.mxu0 %v8444_v22  ;;  %v8477_v22 = vld [vmem:[#allocation5 + $0xcf0] sm:$0xff]   ;;  %v8480_v56 = vld [vmem:[#allocation5 + $0xc78] sm:$0xff]  }
 0x2b0   :  { %v5711_v55 = vadd.f32 %v7501_v2, %v9509_v4  ;;  %v7523_v43 = vadd.f32 %v7522_v23, %v7521_v13  ;;  %v7524_v48 = vpop.f32.mrb[34].mxu1  ;;  %7824 = vmatpush3.bf16.msra.mxu1 %v8443_v25  ;;  %v1233_v4 = vpack.c.bf16 %v9319_v39, %v9319_v39  ;;  %v8460_v39 = vld [vmem:[#allocation5 + $0xc50] sm:$0xff]  }
 0x2b1   :  { %v7525_v26 = vpop.f32.mrb[35].mxu1  ;;  %7825 = vmatprep.subr.bf16.mxu1 %v8445_v47  ;;  %v8478_v47 = vld [vmem:[#allocation5 + $0xc30] sm:$0xff]  }
 0x2b2   :  { %v9520_v24 = vadd.f32 %v7523_v43, %v5711_v55  ;;  %7804 = vmatpush3.bf16.msra.mxu0 %v8446_v0  ;;  %v8481_v43 = vld [vmem:[#allocation5 + $0xcf8] sm:$0xff]   ;;  %v8484_v26 = vld [vmem:[#allocation5 + $0xd40] sm:$0xff]  }
 0x2b3   :  { %7805 = vmatprep.subr.bf16.mxu0 %v8448_v20  ;;  %v8479_v20 = vld [vmem:[#allocation5 + $0xcb0] sm:$0xff]  }
 0x2b4   :  { %7826 = vmatpush3.bf16.msra.mxu1 %v8447_v51  ;;  %v8482_v51 = vld [vmem:[#allocation5 + $0xc38] sm:$0xff]  }
 0x2b5   :  { %7827 = vmatprep.subr.bf16.mxu1 %v8449_v46  ;;  %v8483_v46 = vld [vmem:[#allocation5 + $0xcb8] sm:$0xff]  }
 0x2b6   :  { %7806 = vmatpush3.bf16.msra.mxu0 %v8450_v16  ;;  %v8485_v16 = vld [vmem:[#allocation5 + $0xdc0] sm:$0xff]  }
 0x2b7   :  { %7835 = vmatprep.subr.bf16.mxu0 %v8452_v5  ;;  %v8486_v5 = vld [vmem:[#allocation5 + $0xd00] sm:$0xff]  }
 0x2b8   :  { %7828 = vmatpush3.bf16.msra.mxu1 %v8451_v21 }
 0x2b9   :  { %6269 = vmatmul.mubr.bf16.vlgmr.msra.gmra.mrb[44].mxu0 %v1233_v4  ;;  %7857 = vmatprep.subr.bf16.mxu1 %v8453_v54  ;;  %v8488_v54 = vld [vmem:[#allocation5 + $0xd48] sm:$0xff]  }
 0x2ba   :  { %7836 = vmatpush3.bf16.msra.mxu0 %v8454_v31  ;;  %6348 = vmatprep.mubr.bf16.mxu0 %v1238_v52  ;;  %v9600_v31 = vld [vmem:[#allocation22_spill] sm:$0xff]  ;;  %v9601_v52 = vld [vmem:[#allocation21_spill] sm:$0xff] }
 0x2bb   :  { %6309 = vmatmul.mubr.bf16.vlgmr.msra.gmra.mrb[60].mxu1 %v1235_v12  ;;  %7837 = vmatprep.subr.bf16.mxu0 %v8456_v7  ;;  %v1242_v4 = vpack.c.bf16 %v9600_v31, %v9600_v31  ;;  %v8487_v7 = vld [vmem:[#allocation5 + $0xd80] sm:$0xff]   ;;  %v8489_v12 = vld [vmem:[#allocation5 + $0xdc8] sm:$0xff]   ;;  %v1248_v31 = vpack.c.bf16 %v9396_v53, %v9396_v53 }
 0x2bc   :  { %7858 = vmatpush3.bf16.msra.mxu1 %v8455_v28  ;;  %6388 = vmatprep.mubr.bf16.mxu1 %v1240_v10  ;;  %v1239_v28 = vpack.c.bf16 %v9601_v52, %v9601_v52  ;;  %v8492_v10 = vld [vmem:[#allocation5 + $0xd50] sm:$0xff]   ;;  %v8532_v53 = vld [vmem:[#allocation5 + $0xe60] sm:$0xff]  }
 0x2bd   :  { %7859 = vmatprep.subr.bf16.mxu1 %v8457_v8  ;;  %v1244_v8 = vpack.c.bf16 %v9368_v60, %v9368_v60  ;;  %v8500_v60 = vld [vmem:[#allocation5 + $0xd60] sm:$0xff]   ;;  %v8526_v52 = vld [vmem:[#allocation5 + $0xe10] sm:$0xff]  }
 0x2be   :  { %7838 = vmatpush3.bf16.msra.mxu0 %v8458_v37  ;;  %v8491_v37 = vld [vmem:[#allocation5 + $0xd88] sm:$0xff]  }
 0x2bf   :  { %7839 = vmatprep.subr.bf16.mxu0 %v8460_v39  ;;  %v8493_v39 = vld [vmem:[#allocation5 + $0xdd0] sm:$0xff]  }
 0x2c0   :  { %7860 = vmatpush3.bf16.msra.mxu1 %v8459_v59  ;;  %v8494_v59 = vld [vmem:[#allocation5 + $0xd10] sm:$0xff]  }
 0x2c1   :  { %7861 = vmatprep.subr.bf16.mxu1 %v8461_v62  ;;  %v8496_v62 = vld [vmem:[#allocation5 + $0xd58] sm:$0xff]  }
 0x2c2   :  { %7840 = vmatpush3.bf16.msra.mxu0 %v8462_v58  ;;  %v8495_v58 = vld [vmem:[#allocation5 + $0xd90] sm:$0xff]  }
 0x2c3   :  { %7841 = vmatprep.subr.bf16.mxu0 %v8464_v61  ;;  %v8497_v61 = vld [vmem:[#allocation5 + $0xdd8] sm:$0xff]  }
 0x2c4   :  { %7862 = vmatpush3.bf16.msra.mxu1 %v8463_v29  ;;  %v8498_v29 = vld [vmem:[#allocation5 + $0xd18] sm:$0xff]  }
 0x2c5   :  { %7863 = vmatprep.subr.bf16.mxu1 %v8465_v17  ;;  %v8499_v17 = vld [vmem:[#allocation5 + $0xd98] sm:$0xff]  }
 0x2c6   :  { %7842 = vmatpush3.bf16.msra.mxu0 %v8466_v40  ;;  %v8501_v40 = vld [vmem:[#allocation5 + $0xde0] sm:$0xff]  }
 0x2c7   :  { %7843 = vmatprep.subr.bf16.mxu0 %v8468_v45  ;;  %v8502_v45 = vld [vmem:[#allocation5 + $0xd20] sm:$0xff]  }
 0x2c8   :  { %7864 = vmatpush3.bf16.msra.mxu1 %v8467_v49  ;;  %v8504_v49 = vld [vmem:[#allocation5 + $0xd68] sm:$0xff]  }
 0x2c9   :  { %7865 = vmatprep.subr.bf16.mxu1 %v8469_v30  ;;  %v8503_v30 = vld [vmem:[#allocation5 + $0xda0] sm:$0xff]  }
 0x2ca   :  { %7844 = vmatpush3.bf16.msra.mxu0 %v8470_v33  ;;  %v8505_v33 = vld [vmem:[#allocation5 + $0xde8] sm:$0xff]  }
 0x2cb   :  { %7845 = vmatprep.subr.bf16.mxu0 %v8472_v57  ;;  %v8506_v57 = vld [vmem:[#allocation5 + $0xd28] sm:$0xff]  }
 0x2cc   :  { %7866 = vmatpush3.bf16.msra.mxu1 %v8471_v63  ;;  %v7543_v15 = vpop.f32.mrb[20].mxu0  ;;  %v8508_v63 = vld [vmem:[#allocation5 + $0xd70] sm:$0xff]  }
 0x2cd   :  { %v7544_v44 = vpop.f32.mrb[21].mxu0  ;;  %7867 = vmatprep.subr.bf16.mxu1 %v8473_v50 }
 0x2ce   :  { %v7565_v18 = vpop.f32.mrb[36].mxu1  ;;  %v7545_v25 = vadd.f32 %v7544_v44, %v7543_v15  ;;  %v7546_v38 = vpop.f32.mrb[22].mxu0  ;;  %7846 = vmatpush3.bf16.msra.mxu0 %v8474_v19  ;;  %v8507_v19 = vld [vmem:[#allocation5 + $0xda8] sm:$0xff]   ;;  %v8509_v15 = vld [vmem:[#allocation5 + $0xdf0] sm:$0xff]  }
 0x2cf   :  { %v7566_v13 = vpop.f32.mrb[37].mxu1  ;;  %v7547_v2 = vpop.f32.mrb[23].mxu0  ;;  %7847 = vmatprep.subr.bf16.mxu0 %v8476_v32 }
 0x2d0   :  { %v5791_v0 = vadd.f32 %v7545_v25, %v9520_v24  ;;  %v7567_v23 = vadd.f32 %v7566_v13, %v7565_v18  ;;  %v7568_v9 = vpop.f32.mrb[38].mxu1  ;;  %7868 = vmatpush3.bf16.msra.mxu1 %v8475_v11  ;;  %v9599_v24 = vld [vmem:[#allocation20_spill] sm:$0xff]  ;;  %v8510_v18 = vld [vmem:[#allocation5 + $0xd30] sm:$0xff]  }
 0x2d1   :  { %v7569_v55 = vpop.f32.mrb[39].mxu1  ;;  %7869 = vmatprep.subr.bf16.mxu1 %v8477_v22  ;;  %v1237_v21 = vpack.c.bf16 %v9599_v24, %v9599_v24  ;;  %v8513_v9 = vld [vmem:[#allocation5 + $0xdf8] sm:$0xff]   ;;  %v8519_v24 = vld [vmem:[#allocation5 + $0xe80] sm:$0xff]  }
 0x2d2   :  { %v9531_v48 = vadd.f32 %v7567_v23, %v5791_v0  ;;  %7848 = vmatpush3.bf16.msra.mxu0 %v8478_v47  ;;  %v8512_v47 = vld [vmem:[#allocation5 + $0xd78] sm:$0xff]   ;;  %v8511_v0 = vld [vmem:[#allocation5 + $0xdb0] sm:$0xff]  }
 0x2d3   :  { %7849 = vmatprep.subr.bf16.mxu0 %v8480_v56  ;;  %v8514_v55 = vld [vmem:[#allocation5 + $0xd38] sm:$0xff]  }
 0x2d4   :  { %7870 = vmatpush3.bf16.msra.mxu1 %v8479_v20 }
 0x2d5   :  { %7871 = vmatprep.subr.bf16.mxu1 %v8481_v43  ;;  %v8516_v43 = vld [vmem:[#allocation5 + $0xe40] sm:$0xff]  }
 0x2d6   :  { %7850 = vmatpush3.bf16.msra.mxu0 %v8482_v51  ;;  %v8515_v51 = vld [vmem:[#allocation5 + $0xdb8] sm:$0xff]  }
 0x2d7   :  { %7879 = vmatprep.subr.bf16.mxu0 %v8484_v26  ;;  %v8517_v26 = vld [vmem:[#allocation5 + $0xec0] sm:$0xff]  }
 0x2d8   :  { %7872 = vmatpush3.bf16.msra.mxu1 %v8483_v46  ;;  %v8518_v46 = vld [vmem:[#allocation5 + $0xe00] sm:$0xff]  }
 0x2d9   :  { %6349 = vmatmul.mubr.bf16.vlgmr.msra.gmra.mrb[48].mxu0 %v1237_v21  ;;  %7901 = vmatprep.subr.bf16.mxu1 %v8485_v16  ;;  %v8520_v16 = vld [vmem:[#allocation5 + $0xe48] sm:$0xff]   ;;  %v1243_v21 = vpack.c.bf16 %v9382_v36, %v9382_v36  ;;  %v8528_v36 = vld [vmem:[#allocation5 + $0xe58] sm:$0xff]  }
 0x2da   :  { %7880 = vmatpush3.bf16.msra.mxu0 %v8486_v5  ;;  %6428 = vmatprep.mubr.bf16.mxu0 %v1242_v4  ;;  %v1246_v5 = vpack.c.bf16 %v9389_v34, %v9389_v34  ;;  %v8522_v4 = vld [vmem:[#allocation5 + $0xe08] sm:$0xff]   ;;  %v8525_v34 = vld [vmem:[#allocation5 + $0xed0] sm:$0xff]  }
 0x2db   :  { %6389 = vmatmul.mubr.bf16.vlgmr.msra.gmra.mrb[64].mxu1 %v1239_v28  ;;  %7881 = vmatprep.subr.bf16.mxu0 %v8488_v54  ;;  %v8521_v54 = vld [vmem:[#allocation5 + $0xec8] sm:$0xff]   ;;  %v8527_v28 = vld [vmem:[#allocation5 + $0xe90] sm:$0xff]  }
 0x2dc   :  { %7902 = vmatpush3.bf16.msra.mxu1 %v8487_v7  ;;  %6468 = vmatprep.mubr.bf16.mxu1 %v1244_v8  ;;  %v8523_v7 = vld [vmem:[#allocation5 + $0xe88] sm:$0xff]   ;;  %v8530_v8 = vld [vmem:[#allocation5 + $0xe18] sm:$0xff]  }
 0x2dd   :  { %7903 = vmatprep.subr.bf16.mxu1 %v8489_v12  ;;  %v8529_v12 = vld [vmem:[#allocation5 + $0xed8] sm:$0xff]  }
 0x2de   :  { %7882 = vmatpush3.bf16.msra.mxu0 %v8490_v6  ;;  %v8531_v6 = vld [vmem:[#allocation5 + $0xe98] sm:$0xff]  }
 0x2df   :  { %7883 = vmatprep.subr.bf16.mxu0 %v8492_v10  ;;  %v8533_v10 = vld [vmem:[#allocation5 + $0xee0] sm:$0xff]  }
 0x2e0   :  { %7904 = vmatpush3.bf16.msra.mxu1 %v8491_v37  ;;  %v8534_v37 = vld [vmem:[#allocation5 + $0xe20] sm:$0xff]  }
 0x2e1   :  { %7905 = vmatprep.subr.bf16.mxu1 %v8493_v39  ;;  %v8536_v39 = vld [vmem:[#allocation5 + $0xe68] sm:$0xff]  }
 0x2e2   :  { %7884 = vmatpush3.bf16.msra.mxu0 %v8494_v59  ;;  %v8535_v59 = vld [vmem:[#allocation5 + $0xea0] sm:$0xff]  }
 0x2e3   :  { %7885 = vmatprep.subr.bf16.mxu0 %v8496_v62  ;;  %v8537_v62 = vld [vmem:[#allocation5 + $0xee8] sm:$0xff]  }
 0x2e4   :  { %7906 = vmatpush3.bf16.msra.mxu1 %v8495_v58  ;;  %v8538_v58 = vld [vmem:[#allocation5 + $0xe28] sm:$0xff]  }
 0x2e5   :  { %7907 = vmatprep.subr.bf16.mxu1 %v8497_v61  ;;  %v8540_v61 = vld [vmem:[#allocation5 + $0xe70] sm:$0xff]  }
 0x2e6   :  { %7886 = vmatpush3.bf16.msra.mxu0 %v8498_v29 }
 0x2e7   :  { %7887 = vmatprep.subr.bf16.mxu0 %v8500_v60  ;;  %v8539_v60 = vld [vmem:[#allocation5 + $0xea8] sm:$0xff]  }
 0x2e8   :  { %7908 = vmatpush3.bf16.msra.mxu1 %v8499_v17 }
 0x2e9   :  { %7909 = vmatprep.subr.bf16.mxu1 %v8501_v40  ;;  %v8541_v40 = vld [vmem:[#allocation5 + $0xef0] sm:$0xff]  }
 0x2ea   :  { %7888 = vmatpush3.bf16.msra.mxu0 %v8502_v45 }
 0x2eb   :  { %7889 = vmatprep.subr.bf16.mxu0 %v8504_v49 }
 0x2ec   :  { %7910 = vmatpush3.bf16.msra.mxu1 %v8503_v30  ;;  %v7587_v50 = vpop.f32.mrb[24].mxu0 }
 0x2ed   :  { %v7588_v32 = vpop.f32.mrb[25].mxu0  ;;  %7911 = vmatprep.subr.bf16.mxu1 %v8505_v33  ;;  %v8542_v33 = vld [vmem:[#allocation5 + $0xe30] sm:$0xff]  }
 0x2ee   :  { %v7609_v11 = vpop.f32.mrb[40].mxu1  ;;  %v7589_v44 = vadd.f32 %v7588_v32, %v7587_v50  ;;  %v7590_v22 = vpop.f32.mrb[26].mxu0  ;;  %7890 = vmatpush3.bf16.msra.mxu0 %v8506_v57  ;;  %v8544_v50 = vld [vmem:[#allocation5 + $0xe78] sm:$0xff]  }
 0x2ef   :  { %v7610_v25 = vpop.f32.mrb[41].mxu1  ;;  %v7591_v38 = vpop.f32.mrb[27].mxu0  ;;  %7891 = vmatprep.subr.bf16.mxu0 %v8508_v63  ;;  %v8545_v22 = vld [vmem:[#allocation5 + $0xef8] sm:$0xff]  }
 0x2f0   :  { %v5871_v13 = vadd.f32 %v7589_v44, %v9531_v48  ;;  %v7611_v2 = vadd.f32 %v7610_v25, %v7609_v11  ;;  %v7612_v56 = vpop.f32.mrb[42].mxu1  ;;  %7912 = vmatpush3.bf16.msra.mxu1 %v8507_v19  ;;  %v1241_v48 = vpack.c.bf16 %v9375_v1, %v9375_v1  ;;  %v8524_v1 = vld [vmem:[#allocation5 + $0xe50] sm:$0xff]   ;;  %v8546_v25 = vld [vmem:[#allocation5 + $0xe38] sm:$0xff]   ;;  %v8548_v38 = vld [vmem:[#allocation5 + $0xf40] sm:$0xff]  }
 0x2f1   :  { %v7613_v23 = vpop.f32.mrb[43].mxu1  ;;  %7913 = vmatprep.subr.bf16.mxu1 %v8509_v15  ;;  %v8543_v11 = vld [vmem:[#allocation5 + $0xeb0] sm:$0xff]   ;;  %v1245_v56 = vpack.c.bf16 %v9403_v35, %v9403_v35 }
 0x2f2   :  { %v9542_v20 = vadd.f32 %v7611_v2, %v5871_v13  ;;  %7892 = vmatpush3.bf16.msra.mxu0 %v8510_v18  ;;  %v8549_v13 = vld [vmem:[#allocation5 + $0xfc0] sm:$0xff]   ;;  %v1250_v23 = vpack.c.bf16 %v9417_v14, %v9417_v14  ;;  %v8556_v35 = vld [vmem:[#allocation5 + $0xf50] sm:$0xff]  }
 0x2f3   :  { %7893 = vmatprep.subr.bf16.mxu0 %v8512_v47  ;;  %v8547_v47 = vld [vmem:[#allocation5 + $0xeb8] sm:$0xff]   ;;  %v8550_v2 = vld [vmem:[#allocation5 + $0xf00] sm:$0xff]   ;;  %v8557_v14 = vld [vmem:[#allocation5 + $0xfd0] sm:$0xff]  }
 0x2f4   :  { %7914 = vmatpush3.bf16.msra.mxu1 %v8511_v0  ;;  %v8552_v0 = vld [vmem:[#allocation5 + $0xf48] sm:$0xff]  }
 0x2f5   :  { %7915 = vmatprep.subr.bf16.mxu1 %v8513_v9  ;;  %v8551_v9 = vld [vmem:[#allocation5 + $0xf80] sm:$0xff]  }
 0x2f6   :  { %7894 = vmatpush3.bf16.msra.mxu0 %v8514_v55  ;;  %v8553_v55 = vld [vmem:[#allocation5 + $0xfc8] sm:$0xff]  }
 0x2f7   :  { %7923 = vmatprep.subr.bf16.mxu0 %v8516_v43  ;;  %v1252_v43 = vpack.c.bf16 %v9424_v3, %v9424_v3  ;;  %v8564_v3 = vld [vmem:[#allocation5 + $0xf60] sm:$0xff]  }
 0x2f8   :  { %7916 = vmatpush3.bf16.msra.mxu1 %v8515_v51  ;;  %v8554_v51 = vld [vmem:[#allocation5 + $0xf08] sm:$0xff]  }
 0x2f9   :  { %6429 = vmatmul.mubr.bf16.vlgmr.msra.gmra.mrb[52].mxu0 %v1241_v48  ;;  %7945 = vmatprep.subr.bf16.mxu1 %v8517_v26  ;;  %v8555_v26 = vld [vmem:[#allocation5 + $0xf88] sm:$0xff]   ;;  %v8559_v48 = vld [vmem:[#allocation5 + $0xf90] sm:$0xff]  }
 0x2fa   :  { %7924 = vmatpush3.bf16.msra.mxu0 %v8518_v46  ;;  %6508 = vmatprep.mubr.bf16.mxu0 %v1246_v5  ;;  %v8558_v46 = vld [vmem:[#allocation5 + $0xf10] sm:$0xff]   ;;  %v8562_v5 = vld [vmem:[#allocation5 + $0xf18] sm:$0xff]  }
 0x2fb   :  { %6469 = vmatmul.mubr.bf16.vlgmr.msra.gmra.mrb[68].mxu1 %v1243_v21  ;;  %7925 = vmatprep.subr.bf16.mxu0 %v8520_v16  ;;  %v8561_v16 = vld [vmem:[#allocation5 + $0xfd8] sm:$0xff]   ;;  %v8565_v21 = vld [vmem:[#allocation5 + $0xfe0] sm:$0xff]  }
 0x2fc   :  { %7946 = vmatpush3.bf16.msra.mxu1 %v8519_v24  ;;  %6548 = vmatprep.mubr.bf16.mxu1 %v1248_v31  ;;  %v8563_v24 = vld [vmem:[#allocation5 + $0xf98] sm:$0xff]   ;;  %v8568_v31 = vld [vmem:[#allocation5 + $0xf68] sm:$0xff]  }
 0x2fd   :  { %7947 = vmatprep.subr.bf16.mxu1 %v8521_v54  ;;  %v8566_v54 = vld [vmem:[#allocation5 + $0xf20] sm:$0xff]  }
 0x2fe   :  { %7926 = vmatpush3.bf16.msra.mxu0 %v8522_v4  ;;  %v8567_v4 = vld [vmem:[#allocation5 + $0xfa0] sm:$0xff]  }
 0x2ff   :  { %7927 = vmatprep.subr.bf16.mxu0 %v8524_v1  ;;  %v8569_v1 = vld [vmem:[#allocation5 + $0xfe8] sm:$0xff]  }
 0x300   :  { %7948 = vmatpush3.bf16.msra.mxu1 %v8523_v7  ;;  %v8570_v7 = vld [vmem:[#allocation5 + $0xf28] sm:$0xff]  }
 0x301   :  { %7949 = vmatprep.subr.bf16.mxu1 %v8525_v34  ;;  %v8572_v34 = vld [vmem:[#allocation5 + $0xf70] sm:$0xff]  }
 0x302   :  { %7928 = vmatpush3.bf16.msra.mxu0 %v8526_v52 }
 0x303   :  { %7929 = vmatprep.subr.bf16.mxu0 %v8528_v36  ;;  %v8571_v36 = vld [vmem:[#allocation5 + $0xfa8] sm:$0xff]  }
 0x304   :  { %7950 = vmatpush3.bf16.msra.mxu1 %v8527_v28 }
 0x305   :  { %7951 = vmatprep.subr.bf16.mxu1 %v8529_v12  ;;  %v8573_v12 = vld [vmem:[#allocation5 + $0xff0] sm:$0xff]  }
 0x306   :  { %7930 = vmatpush3.bf16.msra.mxu0 %v8530_v8 }
 0x307   :  { %7931 = vmatprep.subr.bf16.mxu0 %v8532_v53 }
 0x308   :  { %7952 = vmatpush3.bf16.msra.mxu1 %v8531_v6 }
 0x309   :  { %7953 = vmatprep.subr.bf16.mxu1 %v8533_v10  ;;  %v8574_v10 = vld [vmem:[#allocation5 + $0xf30] sm:$0xff]  }
 0x30a   :  { %7932 = vmatpush3.bf16.msra.mxu0 %v8534_v37 }
 0x30b   :  { %7933 = vmatprep.subr.bf16.mxu0 %v8536_v39 }
 0x30c   :  { %7954 = vmatpush3.bf16.msra.mxu1 %v8535_v59  ;;  %v7631_v29 = vpop.f32.mrb[28].mxu0  ;;  %v8576_v59 = vld [vmem:[#allocation5 + $0xf78] sm:$0xff]  }
 0x30d   :  { %v7632_v17 = vpop.f32.mrb[29].mxu0  ;;  %7955 = vmatprep.subr.bf16.mxu1 %v8537_v62 }
 0x30e   :  { %v7653_v45 = vpop.f32.mrb[44].mxu1  ;;  %v7633_v49 = vadd.f32 %v7632_v17, %v7631_v29  ;;  %v7634_v30 = vpop.f32.mrb[30].mxu0  ;;  %7934 = vmatpush3.bf16.msra.mxu0 %v8538_v58  ;;  %v8575_v29 = vld [vmem:[#allocation5 + $0xfb0] sm:$0xff]   ;;  %v8577_v17 = vld [vmem:[#allocation5 + $0xff8] sm:$0xff]  }
 0x30f   :  { %v7654_v57 = vpop.f32.mrb[45].mxu1  ;;  %v7635_v63 = vpop.f32.mrb[31].mxu0  ;;  %7935 = vmatprep.subr.bf16.mxu0 %v8540_v61  ;;  %v1249_v30 = vpack.c.bf16 %v9431_v27, %v9431_v27 }
 0x310   :  { %v5951_v19 = vadd.f32 %v7633_v49, %v9542_v20  ;;  %v7655_v32 = vadd.f32 %v7654_v57, %v7653_v45  ;;  %v7656_v15 = vpop.f32.mrb[46].mxu1  ;;  %7956 = vmatpush3.bf16.msra.mxu1 %v8539_v60  ;;  %v1247_v20 = vpack.c.bf16 %v9410_v42, %v9410_v42  ;;  %v8560_v42 = vld [vmem:[#allocation5 + $0xf58] sm:$0xff]  }
 0x311   :  { %v7657_v44 = vpop.f32.mrb[47].mxu1  ;;  %7957 = vmatprep.subr.bf16.mxu1 %v8541_v40  ;;  %v8578_v45 = vld [vmem:[#allocation5 + $0xf38] sm:$0xff]  }
 0x312   :  { %v9553_v18 = vadd.f32 %v7655_v32, %v5951_v19  ;;  %7936 = vmatpush3.bf16.msra.mxu0 %v8542_v33  ;;  %v8579_v49 = vld [vmem:[#allocation5 + $0xfb8] sm:$0xff]   ;;  %v1251_v33 = vpack.c.bf16 %v9434_v41, %v9434_v41 }
 0x313   :  { %7937 = vmatprep.subr.bf16.mxu0 %v8544_v50 }
 0x314   :  { %7958 = vmatpush3.bf16.msra.mxu1 %v8543_v11 }
 0x315   :  { %7959 = vmatprep.subr.bf16.mxu1 %v8545_v22 }
 0x316   :  { %7938 = vmatpush3.bf16.msra.mxu0 %v8546_v25 }
 0x317   :  { %7967 = vmatprep.subr.bf16.mxu0 %v8548_v38 }
 0x318   :  { %7960 = vmatpush3.bf16.msra.mxu1 %v8547_v47 }
 0x319   :  { %6509 = vmatmul.mubr.bf16.vlgmr.msra.gmra.mrb[56].mxu0 %v1245_v56  ;;  %7989 = vmatprep.subr.bf16.mxu1 %v8549_v13 }
 0x31a   :  { %7968 = vmatpush3.bf16.msra.mxu0 %v8550_v2  ;;  %6588 = vmatprep.mubr.bf16.mxu0 %v1250_v23 }
 0x31b   :  { %6549 = vmatmul.mubr.bf16.vlgmr.msra.gmra.mrb[72].mxu1 %v1247_v20  ;;  %7969 = vmatprep.subr.bf16.mxu0 %v8552_v0 }
 0x31c   :  { %7990 = vmatpush3.bf16.msra.mxu1 %v8551_v9  ;;  %6628 = vmatprep.mubr.bf16.mxu1 %v1252_v43 }
 0x31d   :  { %7991 = vmatprep.subr.bf16.mxu1 %v8553_v55 }
 0x31e   :  { %7970 = vmatpush3.bf16.msra.mxu0 %v8554_v51  ;;  %v8580_v51 = vld [vmem:[#allocation8] sm:$0xff]  }
 0x31f   :  { %7971 = vmatprep.subr.bf16.mxu0 %v8556_v35  ;;  %v8737_v35 = vmov 0.0  }
 0x320   :  { %7992 = vmatpush3.bf16.msra.mxu1 %v8555_v26  ;;  %v8581_v26 = vld [vmem:[#allocation8 + $0x8] sm:$0xff]  }
 0x321   :  { %7993 = vmatprep.subr.bf16.mxu1 %v8557_v14  ;;  %v8582_v14 = vld [vmem:[#allocation8 + $0x10] sm:$0xff]  }
 0x322   :  { %7972 = vmatpush3.bf16.msra.mxu0 %v8558_v46  ;;  %v8583_v46 = vld [vmem:[#allocation8 + $0x18] sm:$0xff]  }
 0x323   :  { %7973 = vmatprep.subr.bf16.mxu0 %v8560_v42  ;;  %v8584_v42 = vld [vmem:[#allocation8 + $0x20] sm:$0xff]  }
 0x324   :  { %7994 = vmatpush3.bf16.msra.mxu1 %v8559_v48 }
 0x325   :  { %7995 = vmatprep.subr.bf16.mxu1 %v8561_v16 }
 0x326   :  { %7974 = vmatpush3.bf16.msra.mxu0 %v8562_v5 }
 0x327   :  { %7975 = vmatprep.subr.bf16.mxu0 %v8564_v3 }
 0x328   :  { %7996 = vmatpush3.bf16.msra.mxu1 %v8563_v24 }
 0x329   :  { %7997 = vmatprep.subr.bf16.mxu1 %v8565_v21 }
 0x32a   :  { %7976 = vmatpush3.bf16.msra.mxu0 %v8566_v54 }
 0x32b   :  { %7977 = vmatprep.subr.bf16.mxu0 %v8568_v31 }
 0x32c   :  { %7998 = vmatpush3.bf16.msra.mxu1 %v8567_v4  ;;  %v7675_v52 = vpop.f32.mrb[32].mxu0 }
 0x32d   :  { %v7676_v28 = vpop.f32.mrb[33].mxu0  ;;  %7999 = vmatprep.subr.bf16.mxu1 %v8569_v1 }
 0x32e   :  { %v7697_v8 = vpop.f32.mrb[48].mxu1  ;;  %v7677_v53 = vadd.f32 %v7676_v28, %v7675_v52  ;;  %v7678_v6 = vpop.f32.mrb[34].mxu0  ;;  %7978 = vmatpush3.bf16.msra.mxu0 %v8570_v7  ;;  %v8585_v52 = vld [vmem:[#allocation8 + $0x28] sm:$0xff]   ;;  %v8587_v28 = vld [vmem:[#allocation8 + $0x38] sm:$0xff]  }
 0x32f   :  { %v7698_v37 = vpop.f32.mrb[49].mxu1  ;;  %v7679_v39 = vpop.f32.mrb[35].mxu0  ;;  %7979 = vmatprep.subr.bf16.mxu0 %v8572_v34 }
 0x330   :  { %v6031_v62 = vadd.f32 %v7677_v53, %v9553_v18  ;;  %v7699_v58 = vadd.f32 %v7698_v37, %v7697_v8  ;;  %v7700_v61 = vpop.f32.mrb[50].mxu1  ;;  %8000 = vmatpush3.bf16.msra.mxu1 %v8571_v36  ;;  %v8586_v36 = vld [vmem:[#allocation8 + $0x30] sm:$0xff]  }
 0x331   :  { %v7701_v60 = vpop.f32.mrb[51].mxu1  ;;  %8001 = vmatprep.subr.bf16.mxu1 %v8573_v12 }
 0x332   :  { %v6071_v40 = vadd.f32 %v7699_v58, %v6031_v62  ;;  %7980 = vmatpush3.bf16.msra.mxu0 %v8574_v10 }
 0x333   :  { %7981 = vmatprep.subr.bf16.mxu0 %v8576_v59 }
 0x334   :  { %8002 = vmatpush3.bf16.msra.mxu1 %v8575_v29 }
 0x335   :  { %8003 = vmatprep.subr.bf16.mxu1 %v8577_v17 }
 0x336   :  { %7982 = vmatpush3.bf16.msra.mxu0 %v8578_v45 }
 0x337   :  { %8020 = vmatprep.subr.bf16.mxu0 %v8737_v35 }
 0x338   :  { %8004 = vmatpush3.bf16.msra.mxu1 %v8579_v49 }
 0x339   :  { %6589 = vmatmul.mubr.bf16.vlgmr.msra.gmra.mrb[60].mxu0 %v1249_v30 }
 0x33a   :  { %8021 = vmatpush3.bf16.msra.mxu0 %v8580_v51  ;;  %8036 = vmatprep.mubr.msk.bf16.mxu0 %vm8738_vm2, %v8737_v35 }
 0x33b   :  { %6629 = vmatmul.mubr.bf16.vlgmr.msra.gmra.mrb[76].mxu1 %v1251_v33  ;;  %8022 = vmatprep.subr.bf16.mxu0 %v8737_v35 }
 0x33e   :  { %8023 = vmatpush3.bf16.msra.mxu0 %v8581_v26 }
 0x33f   :  { %8024 = vmatprep.subr.bf16.mxu0 %v8737_v35 }
 0x342   :  { %8025 = vmatpush3.bf16.msra.mxu0 %v8582_v14 }
 0x343   :  { %8026 = vmatprep.subr.bf16.mxu0 %v8737_v35 }
 0x346   :  { %8027 = vmatpush3.bf16.msra.mxu0 %v8583_v46 }
 0x347   :  { %8028 = vmatprep.subr.bf16.mxu0 %v8737_v35 }
 0x34a   :  { %8029 = vmatpush3.bf16.msra.mxu0 %v8584_v42 }
 0x34b   :  { %8030 = vmatprep.subr.bf16.mxu0 %v8737_v35 }
 0x34c   :  { %v7719_v57 = vpop.f32.mrb[36].mxu0 }
 0x34d   :  { %v7720_v63 = vpop.f32.mrb[37].mxu0 }
 0x34e   :  { %v7741_v50 = vpop.f32.mrb[52].mxu1  ;;  %v7721_v19 = vadd.f32 %v7720_v63, %v7719_v57  ;;  %v7722_v32 = vpop.f32.mrb[38].mxu0  ;;  %8031 = vmatpush3.bf16.msra.mxu0 %v8585_v52 }
 0x34f   :  { %v7742_v15 = vpop.f32.mrb[53].mxu1  ;;  %v7723_v11 = vpop.f32.mrb[39].mxu0  ;;  %8032 = vmatprep.subr.bf16.mxu0 %v8737_v35 }
 0x350   :  { %v6111_v44 = vadd.f32 %v7721_v19, %v6071_v40  ;;  %v7743_v22 = vadd.f32 %v7742_v15, %v7741_v50  ;;  %v7744_v18 = vpop.f32.mrb[54].mxu1 }
 0x351   :  { %v7745_v25 = vpop.f32.mrb[55].mxu1 }
 0x352   :  { %v6151_v38 = vadd.f32 %v7743_v22, %v6111_v44  ;;  %8033 = vmatpush3.bf16.msra.mxu0 %v8586_v36 }
 0x353   :  { %8034 = vmatprep.subr.bf16.mxu0 %v8737_v35 }
 0x356   :  { %8035 = vmatpush3.bf16.msra.mxu0 %v8587_v28 }
 0x36c   :  { %v7763_v47 = vpop.f32.mrb[40].mxu0 }
 0x36d   :  { %v7764_v27 = vpop.f32.mrb[41].mxu0 }
 0x36e   :  { %v7785_v13 = vpop.f32.mrb[56].mxu1  ;;  %v7765_v2 = vadd.f32 %v7764_v27, %v7763_v47  ;;  %v7766_v56 = vpop.f32.mrb[42].mxu0 }
 0x36f   :  { %v7786_v0 = vpop.f32.mrb[57].mxu1  ;;  %v7767_v41 = vpop.f32.mrb[43].mxu0 }
 0x370   :  { %v6191_v23 = vadd.f32 %v7765_v2, %v6151_v38  ;;  %v7787_v9 = vadd.f32 %v7786_v0, %v7785_v13  ;;  %v7788_v20 = vpop.f32.mrb[58].mxu1 }
 0x371   :  { %v7789_v55 = vpop.f32.mrb[59].mxu1 }
 0x372   :  { %v6231_v43 = vadd.f32 %v7787_v9, %v6191_v23 }
 0x38c   :  { %v7807_v48 = vpop.f32.mrb[44].mxu0 }
 0x38d   :  { %v7808_v16 = vpop.f32.mrb[45].mxu0 }
 0x38e   :  { %v7829_v5 = vpop.f32.mrb[60].mxu1  ;;  %v7809_v3 = vadd.f32 %v7808_v16, %v7807_v48  ;;  %v7810_v24 = vpop.f32.mrb[46].mxu0  ;;  %v7298_v16 = vld [vmem:[#allocation10] ss:$0 sm:$0xff] }
 0x38f   :  { %v7830_v21 = vpop.f32.mrb[61].mxu1  ;;  %v7811_v54 = vpop.f32.mrb[47].mxu0 }
 0x390   :  { %v6271_v31 = vadd.f32 %v7809_v3, %v6231_v43  ;;  %v7831_v4 = vadd.f32 %v7830_v21, %v7829_v5  ;;  %v7832_v1 = vpop.f32.mrb[62].mxu1 }
 0x391   :  { %v7833_v7 = vpop.f32.mrb[63].mxu1 }
 0x392   :  { %v6311_v34 = vadd.f32 %v7831_v4, %v6271_v31 }
 0x3ac   :  { %v7851_v12 = vpop.f32.mrb[48].mxu0 }
 0x3ad   :  { %v7852_v8 = vpop.f32.mrb[49].mxu0 }
 0x3ae   :  { %v7873_v53 = vpop.f32.mrb[64].mxu1  ;;  %v7853_v6 = vadd.f32 %v7852_v8, %v7851_v12  ;;  %v7854_v10 = vpop.f32.mrb[50].mxu0 }
 0x3af   :  { %v7874_v37 = vpop.f32.mrb[65].mxu1  ;;  %v7855_v39 = vpop.f32.mrb[51].mxu0 }
 0x3b0   :  { %v6351_v59 = vadd.f32 %v7853_v6, %v6311_v34  ;;  %v7875_v62 = vadd.f32 %v7874_v37, %v7873_v53  ;;  %v7876_v58 = vpop.f32.mrb[66].mxu1 }
 0x3b1   :  { %v7877_v61 = vpop.f32.mrb[67].mxu1 }
 0x3b2   :  { %v6391_v29 = vadd.f32 %v7875_v62, %v6351_v59 }
 0x3cc   :  { %v7895_v60 = vpop.f32.mrb[52].mxu0 }
 0x3cd   :  { %v7896_v17 = vpop.f32.mrb[53].mxu0 }
 0x3ce   :  { %v7917_v40 = vpop.f32.mrb[68].mxu1  ;;  %v7897_v45 = vadd.f32 %v7896_v17, %v7895_v60  ;;  %v7898_v49 = vpop.f32.mrb[54].mxu0 }
 0x3cf   :  { %v7918_v30 = vpop.f32.mrb[69].mxu1  ;;  %v7899_v33 = vpop.f32.mrb[55].mxu0 }
 0x3d0   :  { %v6431_v57 = vadd.f32 %v7897_v45, %v6391_v29  ;;  %v7919_v63 = vadd.f32 %v7918_v30, %v7917_v40  ;;  %v7920_v50 = vpop.f32.mrb[70].mxu1 }
 0x3d1   :  { %v7921_v19 = vpop.f32.mrb[71].mxu1 }
 0x3d2   :  { %v6471_v32 = vadd.f32 %v7919_v63, %v6431_v57 }
 0x3ec   :  { %v7939_v15 = vpop.f32.mrb[56].mxu0 }
 0x3ed   :  { %v7940_v11 = vpop.f32.mrb[57].mxu0 }
 0x3ee   :  { %v7961_v44 = vpop.f32.mrb[72].mxu1  ;;  %v7941_v22 = vadd.f32 %v7940_v11, %v7939_v15  ;;  %v7942_v18 = vpop.f32.mrb[58].mxu0 }
 0x3ef   :  { %v7962_v25 = vpop.f32.mrb[73].mxu1  ;;  %v7943_v38 = vpop.f32.mrb[59].mxu0 }
 0x3f0   :  { %v6511_v47 = vadd.f32 %v7941_v22, %v6471_v32  ;;  %v7963_v27 = vadd.f32 %v7962_v25, %v7961_v44  ;;  %v7964_v13 = vpop.f32.mrb[74].mxu1 }
 0x3f1   :  { %v7965_v2 = vpop.f32.mrb[75].mxu1 }
 0x3f2   :  { %v6551_v56 = vadd.f32 %v7963_v27, %v6511_v47 }
 0x40c   :  { %v7983_v0 = vpop.f32.mrb[60].mxu0 }
 0x40d   :  { %v7984_v41 = vpop.f32.mrb[61].mxu0 }
 0x40e   :  { %v8005_v23 = vpop.f32.mrb[76].mxu1  ;;  %v7985_v9 = vadd.f32 %v7984_v41, %v7983_v0  ;;  %v7986_v20 = vpop.f32.mrb[62].mxu0 }
 0x40f   :  { %v8006_v55 = vpop.f32.mrb[77].mxu1  ;;  %v7987_v43 = vpop.f32.mrb[63].mxu0 }
 0x410   :  { %v6591_v51 = vadd.f32 %v7985_v9, %v6551_v56  ;;  %v8007_v35 = vadd.f32 %v8006_v55, %v8005_v23  ;;  %v8008_v26 = vpop.f32.mrb[78].mxu1 }
 0x411   :  { %v8009_v14 = vpop.f32.mrb[79].mxu1 }
 0x412   :  { %v6631_v46 = vadd.f32 %v8007_v35, %v6591_v51 }
 0x414   :  { %v6636_v42 = vmax.f32 %v6631_v46, 0.0 }
 0x416   :  { %v6637_v48 = vpack.c.bf16 %v6636_v42, %v6636_v42 }
 0x418   :  { %8037 = vmatmul.mubr.bf16.vlgmr.msra.gmra.mrb[64].mxu0 %v6637_v48 }
 0x4eb   :  { %v6743_v5 = vpop.f32.mrb[64].mxu0 }
 0x4ec   :  { %v6744_v3 = vadd.f32 %v7298_v16, %v6743_v5  ;;  %v8038_v24 = vpop.f32.mrb[65].mxu0 }
 0x4ed   :  { %v6746_v21 = vpop.f32.mrb[66].mxu0 }
 0x4ee   :  { %6749 = vst [vmem:[#allocation11] sm:$0x3] %v6744_v3  ;;  %v8039_v54 = vpop.f32.mrb[67].mxu0 }
 0x4ef   :  { %8709 = shalt.err (!%p8706_p2)
}
 0x4f0   :  { %s8710_s16 = scalar_lea.hbm %s9587_s7, 32 }
 0x4f1   :  { %p8711_p3 = scmp.ne.s32.totalorder %s9587_s7, %s8710_s16  ;;  %p8714_p4 = scmp.lt.u32.totalorder %s8710_s16, %s9587_s7 }
 0x4f3   :  { %p8716_p5 = pnand %p8714_p4, %p8711_p3 }
 0x4f5   :  { %8719 = shalt.err (!%p8716_p5)
}
 0x4f6   :  { %6759 = dma.vmem_to_hbm [thread:$0]  %s6757_s2, 32, %s9587_s7, [#allocation4]  }
 0x4f7   :  { %8726 = dma.done.wait [#allocation4], 32  }
 0x4f8   :  { %8727 = vsyncadd [#allocation4], 4294967264 }
 0x4f9   :  { %6763 = vsyncpa [#allocation3], 1 }
 0x4fa   :  { %6764 = vsyncpa [#allocation6], 1 }
 0x4fb   :  { %6765 = vsyncpa [#allocation9], 1 }
 0x4fc   :  { %6766 = vsyncpa [#allocation4], 1 }

</bundles_post_ra>
